<compile_context>
chip_gen: v7x
topology: tpu7x:2x2x1
jax: 0.10.0
libtpu: 0.0.40
codegen_flags: <defaults>
</compile_context>

<pallas_src>
import jax
import jax.numpy as jnp
from jax import lax
from jax.experimental import pallas as pl
from jax.experimental.pallas import tpu as pltpu


def _amm_kernel(fm_src_ref, fm_ref_ref, w3_ref, b3_ref, out_ref):
    fs = fm_src_ref[...]                       # (C, TQ) f32
    fr_bf = fm_ref_ref[...]                    # (C, HW) bf16 (downcast at the call boundary)

    # Fused 1x1 convs + denominator row over the full key axis:
    #   row 0: gamma_ref = w_gamma @ fr + b_gamma
    #   row 1: beta_ref  = w_beta  @ fr + b_beta
    #   row 2: ones      (weights 0, bias 1) -> softmax denominator later
    gbd = jnp.dot(w3_ref[...], fr_bf,
                  preferred_element_type=jnp.float32) + b3_ref[...]          # (3, HW) f32

    # energy[j, i] = 200 * sum_c fm_ref[c, j] * fm_src[c, i]
    # Keys on sublanes, query tile on lanes: both MXU contractions below are in
    # native operand order (no HWxHW transpose), and the softmax max over keys
    # is a cheap cross-vreg reduction. Temperature folded into the smaller
    # (C, TQ) operand; bf16 operands feed the MXU at full rate, f32 accumulate.
    fs_bf = (fs * 200.0).astype(jnp.bfloat16)
    energy = lax.dot_general(
        fr_bf, fs_bf, (((0,), (0,)), ((), ())),
        preferred_element_type=jnp.float32)                                  # (HW, TQ)

    # Unnormalized, max-subtracted softmax numerator (never normalized: it is
    # only contracted against 3 rows). exp stays f32 (v5e has no bf16 EUP);
    # the bf16 cast is only for the MXU operand.
    m = jnp.max(energy, axis=0, keepdims=True)                               # (1, TQ)
    p_bf = jnp.exp(energy - m).astype(jnp.bfloat16)                          # (HW, TQ)

    # nums[g, i] = sum_j gbd[g, j] * p[j, i]
    #   g=0 -> unnormalized new_gamma, g=1 -> unnormalized new_beta,
    #   g=2 -> softmax denominator (ones row dotted with p).
    nums = jnp.dot(gbd.astype(jnp.bfloat16), p_bf,
                   preferred_element_type=jnp.float32)                       # (3, TQ)

    inv_denom = pl.reciprocal(nums[2:3, :], approx=True)                     # (1, TQ)
    new_gamma = nums[0:1, :] * inv_denom
    new_beta = nums[1:2, :] * inv_denom

    # morphed_fm_source = fm_source * (1 + gamma) + beta   (broadcast over C)
    out_ref[...] = fs * (1.0 + new_gamma) + new_beta


def _pick_q_tile(HW, q_tile):
    if q_tile is None or q_tile >= HW:
        return HW
    if HW % q_tile == 0 and q_tile % 128 == 0:
        return q_tile
    return HW


def _vmem_budget_bytes(C, HW, TQ):
    """Everything live per grid step: double-buffered blocks + kernel temps."""
    f32, bf16 = 4, 2
    blocks = 2 * C * TQ * f32                      # fm_source tile (f32 in)
    blocks += 2 * C * HW * bf16                    # fm_reference (bf16 in)
    blocks += 2 * C * TQ * f32                     # output tile (f32 out)
    blocks += 2 * 8 * max(C, 128) * bf16           # w3 (sublane/lane padded)
    blocks += 2 * 8 * 128 * f32                    # b3 (padded)
    temps = HW * TQ * f32                          # energy
    temps += HW * TQ * f32                         # exp(energy - m) before bf16 cast
    temps += HW * TQ * bf16                        # p in bf16 (contraction operand)
    temps += C * TQ * (f32 + bf16)                 # 200*fs and its bf16 cast
    temps += 6 * 8 * max(HW, 128) * f32            # gbd (f32+bf16), nums, small rows
    return blocks + temps


def amm_forward(fm_source, fm_reference, w_gamma, b_gamma, w_beta, b_beta,
                *, q_tile=256):
    """fm_*: (B, 256, H, W) NCHW. conv weights: (1, 256, 1, 1), biases: (1,)."""
    B, C, H, W = fm_source.shape
    HW = H * W
    TQ = _pick_q_tile(HW, q_tile)
    n_q = HW // TQ

    budget = _vmem_budget_bytes(C, HW, TQ)
    # Keep comfortably under the smallest physical VMEM (v7x: 64 MiB / core).
    assert budget <= 48 * 1024 * 1024, (
        "AMM tile footprint too large; reduce q_tile (and for huge feature "
        "maps the key axis would need online-softmax tiling).")
    vmem_limit = int(min(max(2 * budget, 8 * 1024 * 1024), 100 * 1024 * 1024))

    fs = fm_source.reshape(B, C, HW).astype(jnp.float32)
    fr = fm_reference.reshape(B, C, HW).astype(jnp.bfloat16)

    # Stacked 1x1-conv weights: [w_gamma; w_beta; 0], biases [b_gamma; b_beta; 1].
    # The zero-weight / unit-bias row yields the all-ones row used as the
    # softmax denominator after the contraction with p.
    w3 = jnp.concatenate(
        [w_gamma.reshape(1, C).astype(jnp.float32),
         w_beta.reshape(1, C).astype(jnp.float32),
         jnp.zeros((1, C), jnp.float32)], axis=0).astype(jnp.bfloat16)     # (3, C)
    b3 = jnp.concatenate(
        [b_gamma.reshape(1).astype(jnp.float32),
         b_beta.reshape(1).astype(jnp.float32),
         jnp.ones((1,), jnp.float32)]).reshape(3, 1)                       # (3, 1)

    cost = pl.CostEstimate(
        flops=2 * B * (C * HW * HW + 3 * HW * HW + 3 * C * HW),
        transcendentals=B * HW * HW,
        bytes_accessed=B * C * HW * (4 + 2 + 4),
    )

    out = pl.pallas_call(
        _amm_kernel,
        out_shape=jax.ShapeDtypeStruct((B, C, HW), jnp.float32),
        grid_spec=pltpu.PrefetchScalarGridSpec(
            num_scalar_prefetch=0,
            grid=(B, n_q),
            in_specs=[
                pl.BlockSpec((None, C, TQ), lambda b, q: (b, 0, q)),  # fm_source tile
                pl.BlockSpec((None, C, HW), lambda b, q: (b, 0, 0)),  # fm_reference (resident over q)
                pl.BlockSpec((3, C), lambda b, q: (0, 0)),            # stacked conv weights
                pl.BlockSpec((3, 1), lambda b, q: (0, 0)),            # stacked biases (+1)
            ],
            out_specs=pl.BlockSpec((None, C, TQ), lambda b, q: (b, 0, q)),
        ),
        compiler_params=pltpu.CompilerParams(
            dimension_semantics=("parallel", "parallel"),
            vmem_limit_bytes=vmem_limit),
        cost_estimate=cost,
    )(fs, fr, w3, b3)
    return out.reshape(B, C, H, W)


def amm_reference(fm_source, fm_reference, w_gamma, b_gamma, w_beta, b_beta):
    """Pure-JAX f32 reference mirroring the PyTorch forward (gamma=None, ret=False)."""
    B, C, H, W = fm_source.shape
    HW = H * W
    fs = fm_source.reshape(B, C, HW)
    fr = fm_reference.reshape(B, C, HW)
    g = jnp.einsum('c,bcn->bn', w_gamma.reshape(C), fr) + b_gamma.reshape(())
    be = jnp.einsum('c,bcn->bn', w_beta.reshape(C), fr) + b_beta.reshape(())
    energy = jnp.einsum('bci,bcj->bij', fs, fr) * 200.0
    attn = jax.nn.softmax(energy, axis=-1)
    new_g = jnp.einsum('bj,bij->bi', g, attn)
    new_b = jnp.einsum('bj,bij->bi', be, attn)
    out = fs * (1.0 + new_g[:, None, :]) + new_b[:, None, :]
    return out.reshape(B, C, H, W)


if __name__ == "__main__":
    # The module hard-codes 256 input channels for its 1x1 convs, so C=256.
    B, C, H, W = 2, 256, 16, 16

    key = jax.random.PRNGKey(0)
    k1, k2, k3, k4, k5, k6 = jax.random.split(key, 6)
    fm_source = 0.1 * jax.random.normal(k1, (B, C, H, W), dtype=jnp.float32)
    fm_reference = 0.1 * jax.random.normal(k2, (B, C, H, W), dtype=jnp.float32)
    # Deterministic synthetic Conv2d(256->1, k=1) parameters.
    w_gamma = 0.05 * jax.random.normal(k3, (1, C, 1, 1), dtype=jnp.float32)
    b_gamma = 0.01 * jax.random.normal(k4, (1,), dtype=jnp.float32)
    w_beta = 0.05 * jax.random.normal(k5, (1, C, 1, 1), dtype=jnp.float32)
    b_beta = 0.01 * jax.random.normal(k6, (1,), dtype=jnp.float32)

    # mask_source / mask_ref are unused in the default forward path
    # (gamma=None, ret=False), so they are not inputs to the kernel.
    # q_tile=128 exercises the query-row tiling (grid = (2, 2)).
    out = amm_forward(fm_source, fm_reference, w_gamma, b_gamma, w_beta, b_beta,
                      q_tile=128)
    out = jax.block_until_ready(out)

    ref = amm_reference(fm_source, fm_reference, w_gamma, b_gamma, w_beta, b_beta)
    assert out.shape == (B, C, H, W)
    # Tolerance covers bf16 MXU operands (fm_reference, x200-scaled fm_source,
    # gamma/beta rows, p) and the EUP approximate reciprocal (~2^-12 rel).
    assert jnp.allclose(out, ref, rtol=2e-2, atol=2e-2), "mismatch vs reference"

    print("KERNEL_OK")
</pallas_src>

<mosaic_0001>
module attributes {stable_mosaic.version = 11 : i64} {
  func.func @_amm_kernel(%arg0: i32, %arg1: i32, %arg2: memref<1x256x128xf32, #tpu.memory_space<vmem>>, %arg3: memref<1x256x256xbf16, #tpu.memory_space<vmem>>, %arg4: memref<3x256xbf16, #tpu.memory_space<vmem>>, %arg5: memref<3x1xf32, #tpu.memory_space<vmem>>, %arg6: memref<1x256x128xf32, #tpu.memory_space<vmem>>) attributes {dimension_semantics = [#tpu.dimension_semantics<parallel>, #tpu.dimension_semantics<parallel>], iteration_bounds = array<i64: 2, 2>, scalar_prefetch = 0 : i64, scratch_operands = 0 : i64, tpu.core_type = #tpu.core_type<tc>, window_params = [{transform_indices = @transform_0, window_bounds = array<i64: 1, 256, 128>}, {transform_indices = @transform_1, window_bounds = array<i64: 1, 256, 256>}, {pipeline_mode = #tpu.pipeline_mode<synchronous>, transform_indices = @transform_2, window_bounds = array<i64: 3, 256>}, {pipeline_mode = #tpu.pipeline_mode<synchronous>, transform_indices = @transform_3, window_bounds = array<i64: 3, 1>}, {transform_indices = @transform_4, window_bounds = array<i64: 1, 256, 128>}]} {
    %c0 = arith.constant 0 : index
    %c0_0 = arith.constant 0 : index
    %c0_1 = arith.constant 0 : index
    %0 = vector.load %arg2[%c0, %c0_0, %c0_1] : memref<1x256x128xf32, #tpu.memory_space<vmem>>, vector<1x256x128xf32>
    %1 = vector.shape_cast %0 : vector<1x256x128xf32> to vector<256x128xf32>
    %c0_2 = arith.constant 0 : index
    %c0_3 = arith.constant 0 : index
    %c0_4 = arith.constant 0 : index
    %2 = vector.load %arg3[%c0_2, %c0_3, %c0_4] : memref<1x256x256xbf16, #tpu.memory_space<vmem>>, vector<1x256x256xbf16>
    %3 = vector.shape_cast %2 : vector<1x256x256xbf16> to vector<256x256xbf16>
    %c0_5 = arith.constant 0 : index
    %c0_6 = arith.constant 0 : index
    %4 = vector.load %arg4[%c0_5, %c0_6] : memref<3x256xbf16, #tpu.memory_space<vmem>>, vector<3x256xbf16>
    %cst = arith.constant dense<0.000000e+00> : vector<3x256xf32>
    %5 = tpu.matmul %4, %3, %cst {dimension_numbers = #tpu.dot_dimension_numbers<[1], [0], [0], [1], [0, 0, 1, 1], [], []>} : vector<3x256xbf16>, vector<256x256xbf16>, vector<3x256xf32> -> vector<3x256xf32>
    %c0_7 = arith.constant 0 : index
    %c0_8 = arith.constant 0 : index
    %6 = vector.load %arg5[%c0_7, %c0_8] : memref<3x1xf32, #tpu.memory_space<vmem>>, vector<3x1xf32>
    %7 = vector.broadcast %6 : vector<3x1xf32> to vector<3x256xf32>
    %8 = arith.addf %5, %7 : vector<3x256xf32>
    %cst_9 = arith.constant 2.000000e+02 : f32
    %9 = vector.broadcast %cst_9 : f32 to vector<256x128xf32>
    %10 = arith.mulf %1, %9 : vector<256x128xf32>
    %11 = arith.truncf %10 : vector<256x128xf32> to vector<256x128xbf16>
    %cst_10 = arith.constant dense<0.000000e+00> : vector<256x128xf32>
    %12 = tpu.matmul %3, %11, %cst_10 {dimension_numbers = #tpu.dot_dimension_numbers<[0], [0], [1], [1], [0, 1, 1, 1], [], []>} : vector<256x256xbf16>, vector<256x128xbf16>, vector<256x128xf32> -> vector<256x128xf32>
    %cst_11 = arith.constant dense<0xFF800000> : vector<128xf32>
    %13 = vector.multi_reduction <maximumf>, %12, %cst_11 [0] : vector<256x128xf32> to vector<128xf32>
    %14 = vector.shape_cast %13 : vector<128xf32> to vector<1x128xf32>
    %15 = vector.broadcast %14 : vector<1x128xf32> to vector<256x128xf32>
    %16 = arith.subf %12, %15 : vector<256x128xf32>
    %17 = math.exp %16 : vector<256x128xf32>
    %18 = arith.truncf %17 : vector<256x128xf32> to vector<256x128xbf16>
    %19 = arith.truncf %8 : vector<3x256xf32> to vector<3x256xbf16>
    %cst_12 = arith.constant dense<0.000000e+00> : vector<3x128xf32>
    %20 = tpu.matmul %19, %18, %cst_12 {dimension_numbers = #tpu.dot_dimension_numbers<[1], [0], [0], [1], [0, 0, 1, 1], [], []>} : vector<3x256xbf16>, vector<256x128xbf16>, vector<3x128xf32> -> vector<3x128xf32>
    %21 = vector.extract_strided_slice %20 {offsets = [2, 0], sizes = [1, 128], strides = [1, 1]} : vector<3x128xf32> to vector<1x128xf32>
    %22 = tpu.reciprocal %21 {approx = true} : vector<1x128xf32> -> vector<1x128xf32>
    %23 = vector.extract_strided_slice %20 {offsets = [0, 0], sizes = [1, 128], strides = [1, 1]} : vector<3x128xf32> to vector<1x128xf32>
    %24 = arith.mulf %23, %22 : vector<1x128xf32>
    %25 = vector.extract_strided_slice %20 {offsets = [1, 0], sizes = [1, 128], strides = [1, 1]} : vector<3x128xf32> to vector<1x128xf32>
    %26 = arith.mulf %25, %22 : vector<1x128xf32>
    %cst_13 = arith.constant 1.000000e+00 : f32
    %27 = vector.broadcast %cst_13 : f32 to vector<1x128xf32>
    %28 = arith.addf %27, %24 : vector<1x128xf32>
    %29 = vector.broadcast %28 : vector<1x128xf32> to vector<256x128xf32>
    %30 = arith.mulf %1, %29 : vector<256x128xf32>
    %31 = vector.broadcast %26 : vector<1x128xf32> to vector<256x128xf32>
    %32 = arith.addf %30, %31 : vector<256x128xf32>
    %c0_14 = arith.constant 0 : index
    %c0_15 = arith.constant 0 : index
    %c0_16 = arith.constant 0 : index
    %33 = vector.load %arg6[%c0_14, %c0_15, %c0_16] : memref<1x256x128xf32, #tpu.memory_space<vmem>>, vector<1x256x128xf32>
    %34 = vector.shape_cast %33 : vector<1x256x128xf32> to vector<256x128xf32>
    %35 = vector.shape_cast %32 : vector<256x128xf32> to vector<1x256x128xf32>
    tpu.vector_store %arg6[%c0_14, %c0_15, %c0_16], %35 {strides = array<i32>} : memref<1x256x128xf32, #tpu.memory_space<vmem>>, vector<1x256x128xf32>,
    return
  }
  func.func @transform_0(%arg0: i32, %arg1: i32) -> (i32, i32, i32) {
    %c0_i32 = arith.constant 0 : i32
    %c0_i32_0 = arith.constant 0 : i32
    return %arg0, %c0_i32, %arg1 : i32, i32, i32
  }
  func.func @transform_1(%arg0: i32, %arg1: i32) -> (i32, i32, i32) {
    %c0_i32 = arith.constant 0 : i32
    %c0_i32_0 = arith.constant 0 : i32
    %c0_i32_1 = arith.constant 0 : i32
    return %arg0, %c0_i32, %c0_i32_0 : i32, i32, i32
  }
  func.func @transform_2(%arg0: i32, %arg1: i32) -> (i32, i32) {
    %c0_i32 = arith.constant 0 : i32
    %c0_i32_0 = arith.constant 0 : i32
    %c0_i32_1 = arith.constant 0 : i32
    return %c0_i32, %c0_i32_0 : i32, i32
  }
  func.func @transform_3(%arg0: i32, %arg1: i32) -> (i32, i32) {
    %c0_i32 = arith.constant 0 : i32
    %c0_i32_0 = arith.constant 0 : i32
    %c0_i32_1 = arith.constant 0 : i32
    return %c0_i32, %c0_i32_0 : i32, i32
  }
  func.func @transform_4(%arg0: i32, %arg1: i32) -> (i32, i32, i32) {
    %c0_i32 = arith.constant 0 : i32
    %c0_i32_0 = arith.constant 0 : i32
    return %arg0, %c0_i32, %arg1 : i32, i32, i32
  }
}

</mosaic_0001>

<bundles_post_ra>
// kernel: tpu_custom_call.1
= control target key start
LH: loop header
LB: loop body
LE: loop exit
PB: predicated region body
PF: predicated region fallthrough
CT: control target
= control target key end

     0   :  { %s2768_s0 = inlined_call_operand.hbm [shape: f32[2,256,256], index: 0, kind: input, shape index: {}]   ;;  %s2769_s1 = inlined_call_operand.hbm [shape: bf16[2,256,256], index: 1, kind: input, shape index: {}]   ;;  %s2770_s2 = inlined_call_operand.vmem [shape: bf16[3,256], index: 2, kind: input, shape index: {}]   ;;  %s2771_s3 = inlined_call_operand.vmem [shape: f32[3,1], index: 3, kind: input, shape index: {}]   ;;  %s2772_s4 = inlined_call_operand.hbm [shape: f32[2,256,256], index: 4, kind: output, shape index: {}]  }
   0x1   :  { %2788 = sst [smem:[#allocation16_spill]] %s2772_s4 }
   0x2   :  { %9 = vsyncpa [#allocation3], 0 }
   0x3   :  { %11 = vsyncpa [#allocation3 + $0x1], 0 }
   0x4   :  { %12 = vsyncpa [#allocation6], 0 }
   0x5   :  { %14 = vsyncpa [#allocation6 + $0x1], 0 }
   0x6   :  { %15 = vsyncpa [#allocation4], 0 }
   0x7   :  { %17 = vsyncpa [#allocation4 + $0x1], 0  ;;  %s1919_s15 = smov 0   ;;  %s1921_s16 = smov 0  }
   0x8   :  { %s1923_s17 = smov 0   ;;  %s1925_s18 = smov 0  }
   0x9   :  { %s1927_s19 = smov 0   ;;  %s1929_s20 = smov 0  }
   0xa   :  { %s1931_s21 = smov 0   ;;  %s1933_s22 = smov 0  }
   0xb   :  { %s1935_s23 = smov 0   ;;  %s1937_s24 = smov 0  }
   0xc   :  { %s1939_s25 = smov 0  }
   0xd LB: > { %s2773_s26 = sadd.s32 4294967295, %s1882_s25   ;;  %s1261_s27 = sadd.s32 4294967294, %s1882_s25   ;;  %s1882_s25 = sphi %s1939_s25, %s23_s25   ;;  %s1878_s24 = sphi %s1937_s24, %s2829_s24   ;;  %s1874_s23 = sphi %s1935_s23, %s2828_s23   ;;  %s1870_s22 = sphi %s1933_s22, %s2827_s22   ;;  %s1866_s21 = sphi %s1931_s21, %s2826_s21   ;;  %s1862_s20 = sphi %s1929_s20, %s2825_s20   ;;  %s1858_s19 = sphi %s1927_s19, %s2824_s19   ;;  %s1854_s18 = sphi %s1925_s18, %s2823_s18   ;;  %s1850_s17 = sphi %s1923_s17, %s2822_s17   ;;  %s1846_s16 = sphi %s1921_s16, %s2821_s16   ;;  %s1842_s15 = sphi %s1919_s15, %s2820_s15  }
   0xe   : > { %s32_s28 = sadd.s32 1, %s1874_s23  ;;  %s35_s29 = sadd.s32 1, %s1878_s24 }
   0xf   : > { %p33_p0 = scmp.ge.s32.totalorder %s32_s28, 2  ;;  %s44_s30 = sadd.s32 1, %s1862_s20 }
  0x10   : > { %p51_p1 = scmp.ne.s32.totalorder %s1862_s20, %s1858_s19  ;;  %p2781_p2 = scmp.eq.s32.totalorder %s1882_s25, 0 }
  0x11   : > { %s2831_s28 = smov (%p33_p0, %s32_s28), 0  ;;  %s2833_s29 = smov (!%p33_p0, %s35_s29), %s1878_s24 }
  0x12   : > { %2789 = sst [smem:[#allocation11_spill]] %s2831_s28  ;;  %s40_s5 = ssub.s32 %s1874_s23, %s2831_s28 }
  0x13   : > { %p1989_p3 = por %p2781_p2, %p51_p1  ;;  %p37_p4 = scmp.ge.s32.totalorder %s2833_s29, 2 }
  0x14   : > { %p2782_p5 = scmp.ne.s32.totalorder %s1858_s19, %s1854_s18  ;;  %p151_p6 = scmp.eq.s32.totalorder %s2773_s26, 3 }
  0x15   : > { %p157_p7 = scmp.eq.s32.totalorder %s1261_s27, 3  ;;  %s2835_s29 = smov (%p37_p4, %s2833_s29), 0 }
  0x16   : > { %2791 = sst [smem:[#allocation12_spill]] %s2835_s29  ;;  %p1999_p8 = por %p151_p6, %p51_p1 }
  0x17   : > { %p2006_p9 = por %p157_p7, %p2782_p5  ;;  %s2012_s9 = ssub.s32 %s1878_s24, %s2835_s29 }
  0x18   : > { %s2792_s7 = scalar_select %p1999_p8, 1, 0 }
  0x19   : > { %s2794_s8 = scalar_select %p2006_p9, 1, 0 }
  0x1a   : > { %2793 = sst [smem:[#allocation13_spill]] %s2792_s7  ;;  %s41_s10 = sor.u32 %s40_s5, %s2012_s9 }
  0x1b   : > { %2795 = sst [smem:[#allocation14_spill]] %s2794_s8  ;;  %p42_p11 = scmp.eq.s32.totalorder %s41_s10, 0 }
  0x1c   : > { %p2780_p12 = scmp.lt.s32.totalorder %s1882_s25, 4  ;;  %s183_s11 = sand.u32 1, %s1862_s20  }
  0x1d   : > { %s1265_s12 = sshll.u32 %s1878_s24, 6  ;;  %s1264_s14 = sshll.u32 %s183_s11, 8 }
  0x1e   : > { %s2020_s13 = scalar_select %p42_p11, %s1862_s20, %s44_s30  }
  0x1f   : > { %s192_s27 = sadd.s32 %s1874_s23, %s1265_s12  ;;  %s187_s28 = scalar_lea.vmem [#allocation2], %s1264_s14 }
  0x20   : > { %s1266_s26 = sshll.u32 %s192_s27, 7  ;;  %s195_s8 = sshll.u32 %s187_s28, 4  ;;  %s2028_s8 = int_to_ptr.vmem [resolvable:$true] %s195_s8 }
  0x21   : > { %s2026_s29 = scalar_lea.hbm %s2768_s0, %s1266_s26  ;;  %p2034_p13 = pnand %p2780_p12, %p1989_p3 }
  0x22   : > { %s2039_s28 = scalar_lea.sflag [#allocation3], %s183_s11  ;;  %s1696_s4 = scalar_lea.hbm %s2026_s29, 4096 }
  0x23   : > { %p1697_p1 = scmp.ne.s32.totalorder %s2026_s29, %s1696_s4  ;;  %p1698_p4 = pneg %p2034_p13 }
  0x24   : > { %s1701_s6 = scalar_lea.hbm %s2768_s0, 16384  ;;  %p1702_p3 = scmp.lt.u32.totalorder %s2026_s29, %s2768_s0 }
  0x25   : > { %p1699_p6 = pnand %p1698_p4, %p1697_p1  ;;  %p1703_p11 = scmp.lt.u32.totalorder %s1701_s6, %s1696_s4 }
  0x26   : > { %p1705_p2 = scmp.lt.u32.totalorder %s1696_s4, %s2026_s29 }
  0x27   : > { %p1700_p7 = pneg %p1699_p6  ;;  %p1704_p12 = por %p1703_p11, %p1702_p3 }
  0x29   : > { %p1706_p5 = por %p1705_p2, %p1704_p12 }
  0x2b   : > { %p1707_p10 = pnand %p1706_p5, %p1700_p7 }
  0x2d   : > { %1710 = shalt.err (!%p1707_p10)
}
  0x2e   : > { %s1711_s11 = scalar_lea.vmem %s2028_s8, 4096  ;;  %s1884_s12 = smov [#allocation2]  }
  0x2f   : > { %p1712_p1 = scmp.ne.s32.totalorder %s2028_s8, %s1711_s11  ;;  %s1716_s14 = sshll.u32 %s1884_s12, 4  ;;  %s1717_s14 = int_to_ptr.vmem [resolvable:$false] %s1716_s14 }
  0x30   : > { %s1718_s27 = scalar_lea.vmem %s1717_s14, 8192  ;;  %p1719_p9 = scmp.lt.s32.totalorder %s2028_s8, %s1717_s14 }
  0x31   : > { %p1714_p6 = pnand %p1712_p1, %p1698_p4  ;;  %p1720_p3 = scmp.lt.s32.totalorder %s1718_s27, %s1711_s11 }
  0x33   : > { %p1715_p0 = pneg %p1714_p6  ;;  %p1721_p11 = por %p1720_p3, %p1719_p9 }
  0x35   : > { %p1722_p2 = pnand %p1721_p11, %p1715_p0 }
  0x37   : > { %1725 = shalt.err (!%p1722_p2)
}
  0x38   : > { %s1885_s4 = smov 256   ;;  %s2783_s26 = smov 128  }
  0x39   : > { %s1887_s5 = smov 8   ;;  %p224_p5 = scmp.lt.s32.totalorder %s1882_s25, 5 }
  0x3a   : > { %1456 = dma.hbm_to_vmem [thread:$0]  (!%p2034_p13), %s2026_s29, 4096, %s2028_s8, %s2039_s28, %s1885_s4, %s2783_s26, %s1887_s5  }
  0x3b   : > { %p2797_p9 = scmp.ge.s32.totalorder %s1882_s25, 1  ;;  %s2799_s7 = sadd.s32 4294967295, %s1882_s25  }
  0x3c   : > { %p58_p12 = scmp.eq.s32.totalorder %s2799_s7, 0  ;;  %s70_s10 = sadd.s32 1, %s1850_s17 }
  0x3d   : > { %p2072_p10 = pnand %p2797_p9, %p224_p5  ;;  %p2800_p0 = scmp.eq.s32.totalorder %s2012_s9, 0 }
  0x3e   : > { %p2801_p4 = scmp.ne.s32.totalorder %s1858_s19, %s1854_s18  ;;  %p77_p1 = scmp.ne.s32.totalorder %s1850_s17, %s1846_s16 }
  0x3f   : > { %s2082_s11 = scalar_select %p2800_p0, %s1850_s17, %s70_s10  }
  0x40   : > { %p2087_p7 = por %p58_p12, %p2801_p4  ;;  %p83_p13 = scmp.ne.s32.totalorder %s1846_s16, %s1842_s15 }
  0x41   : > { %s205_s29 = sand.u32 1, %s1850_s17   ;;  %p2803_p6 = scmp.eq.s32.totalorder %s1882_s25, 0 }
  0x42   : > { %s2802_s12 = scalar_select %p2087_p7, 1, 0 }
  0x43   : > { %p79_p3 = por %p77_p1, %p2803_p6  ;;  %p2098_p11 = por %p83_p13, %p58_p12 }
  0x44   : > { %s1267_s30 = sshll.u32 %s205_s29, 8  ;;  %s1312_s28 = sshll.u32 %s1878_s24, 12 }
  0x45   : > { %s2804_s8 = scalar_select %p2098_p11, 1, 0 }
  0x46   : > { %s2106_s27 = scalar_lea.hbm %s2769_s1, %s1312_s28  ;;  %s209_s4 = scalar_lea.vmem [#allocation5], %s1267_s30 }
  0x47   : > { %s216_s15 = sshll.u32 %s209_s4, 4  ;;  %p2805_p2 = scmp.lt.s32.totalorder %s1882_s25, 4  ;;  %s2108_s15 = int_to_ptr.vmem [resolvable:$true] %s216_s15 }
  0x48   : > { %s2116_s10 = scalar_lea.sflag [#allocation6], %s205_s29  ;;  %s1726_s14 = scalar_lea.hbm %s2106_s27, 4096 }
  0x49   : > { %p2112_p5 = pnand %p2805_p2, %p79_p3  ;;  %p1727_p9 = scmp.ne.s32.totalorder %s2106_s27, %s1726_s14 }
  0x4a   : > { %s1731_s9 = scalar_lea.hbm %s2769_s1, 8192  ;;  %p1732_p1 = scmp.lt.u32.totalorder %s2106_s27, %s2769_s1 }
  0x4b   : > { %p1728_p12 = pneg %p2112_p5  ;;  %p1733_p13 = scmp.lt.u32.totalorder %s1731_s9, %s1726_s14 }
  0x4c   : > { %p1735_p3 = scmp.lt.u32.totalorder %s1726_s14, %s2106_s27 }
  0x4d   : > { %p1729_p0 = pnand %p1728_p12, %p1727_p9  ;;  %p1734_p6 = por %p1733_p13, %p1732_p1 }
  0x4f   : > { %p1730_p4 = pneg %p1729_p0  ;;  %p1736_p2 = por %p1735_p3, %p1734_p6 }
  0x51   : > { %p1737_p8 = pnand %p1736_p2, %p1730_p4 }
  0x53   : > { %1740 = shalt.err (!%p1737_p8)
}
  0x54   : > { %s1741_s29 = scalar_lea.vmem %s2108_s15, 4096  ;;  %s1888_s30 = smov [#allocation5]  }
  0x55   : > { %p1742_p9 = scmp.ne.s32.totalorder %s2108_s15, %s1741_s29  ;;  %s1746_s28 = sshll.u32 %s1888_s30, 4  ;;  %s1747_s28 = int_to_ptr.vmem [resolvable:$false] %s1746_s28 }
  0x56   : > { %s1748_s26 = scalar_lea.vmem %s1747_s28, 8192  ;;  %p1749_p7 = scmp.lt.s32.totalorder %s2108_s15, %s1747_s28 }
  0x57   : > { %p1744_p0 = pnand %p1742_p9, %p1728_p12  ;;  %p1750_p1 = scmp.lt.s32.totalorder %s1748_s26, %s1741_s29 }
  0x59   : > { %p1745_p11 = pneg %p1744_p0  ;;  %p1751_p13 = por %p1750_p1, %p1749_p7 }
  0x5b   : > { %p1752_p6 = pnand %p1751_p13, %p1745_p11 }
  0x5d   : > { %1755 = shalt.err (!%p1752_p6)
}
  0x5e   : > { %s2807_s14 = smov 128   ;;  %228 = sbr.rel (%p2072_p10) target bundleno = 917 (0x395), region = 36 }
  0x5f   : > { %1459 = dma.hbm_to_vmem [thread:$0]  (!%p2112_p5), %s2106_s27, 4096, %s2108_s15, %s2116_s10, %s2807_s14, %s2807_s14, %s1887_s5  }
  0x65   : > { %s2150_s9 = sand.u32 1, %s1858_s19   ;;  %p2808_p8 = scmp.ne.s32.totalorder %s2802_s12, 0 }
  0x66   : > { %s1271_s4 = sshll.u32 %s2150_s9, 8  ;;  %s231_s29 = scalar_lea.sflag [#allocation3], %s2150_s9 }
  0x67   : > { %s2156_s7 = scalar_lea.vmem [#allocation2], %s1271_s4 }
  0x68   : > { %1829 = dma.done.wait (%p2808_p8), %s231_s29, 4096  }
  0x69   : > { %1831 = vsyncadd (%p2808_p8), %s231_s29, 4294963200  ;;  %s239_s5 = sand.u32 1, %s1846_s16   ;;  %p2809_p10 = scmp.ne.s32.totalorder %s2804_s8, 0 }
  0x6a   : > { %s1272_s6 = sshll.u32 %s239_s5, 8  ;;  %s240_s27 = scalar_lea.sflag [#allocation6], %s239_s5 }
  0x6b   : > { %s2163_s15 = scalar_lea.vmem [#allocation5], %s1272_s6 }
  0x6c   : > { %1833 = dma.done.wait (%p2809_p10), %s240_s27, 4096  }
  0x6d   : > { %1835 = vsyncadd (%p2809_p10), %s240_s27, 4294963200  ;;  %v2170_v0 = vld [vmem:[%s2163_s15 + $0x80] ss:$8 sps:$4 sm:$0xff]   ;;  %v2175_v2 = vld [vmem:[%s2163_s15 + $0x90] ss:$8 sps:$4 sm:$0xff]   ;;  %s1308_s28 = sshll.u32 %s1870_s22, 6 }
  0x6e   : > { %v1564_v1 = vld [vmem:[%s2163_s15] ss:$8 sps:$4 sm:$0xff]   ;;  %637 = vxpose.xlu0.c.b16.start [1/8] %v2170_v0, 128  ;;  %v2178_v3 = vld [vmem:[%s2163_s15 + $0x10] ss:$8 sps:$4 sm:$0xff]   ;;  %v2216_v13 = vld [vmem:[%s2163_s15 + $0x14] ss:$8 sps:$4 sm:$0xff]   ;;  %s2628_s22 = sadd.s32 %s1866_s21, %s1308_s28 }
  0x6f   : > { %605 = vxpose.xlu1.c.b16.start [1/8] %v1564_v1, 128  ;;  %v2182_v4 = vld [vmem:[%s2163_s15 + $0xa0] ss:$8 sps:$4 sm:$0xff]   ;;  %v2190_v6 = vld [vmem:[%s2163_s15 + $0xb0] ss:$8 sps:$4 sm:$0xff]   ;;  %v2222_v15 = vld [vmem:[%s2163_s15 + $0x4] ss:$8 sps:$4 sm:$0xff]  }
  0x70   : > { %v2186_v5 = vld [vmem:[%s2163_s15 + $0x20] ss:$8 sps:$4 sm:$0xff]   ;;  %v2194_v7 = vld [vmem:[%s2163_s15 + $0x30] ss:$8 sps:$4 sm:$0xff]   ;;  %516 = vmatprep.subr.bf16.mxu0 %v2222_v15  ;;  %v2247_v44 = vld [vmem:[%s2163_s15 + $0x24] ss:$8 sps:$4 sm:$0xff]  }
  0x71   : > { %v2198_v8 = vld [vmem:[%s2163_s15 + $0xc0] ss:$8 sps:$4 sm:$0xff]   ;;  %v2206_v10 = vld [vmem:[%s2163_s15 + $0xd0] ss:$8 sps:$4 sm:$0xff]   ;;  %517 = vmatpush1.bf16.msra.mxu0 %v1564_v1  ;;  %v2261_v56 = vld [vmem:[%s2163_s15 + $0x84] ss:$8 sps:$4 sm:$0xff]  }
  0x72   : > { %638 = vxpose.xlu0.c.b16.cont [2/8] %v2175_v2, 128  ;;  %v2202_v9 = vld [vmem:[%s2163_s15 + $0x40] ss:$8 sps:$4 sm:$0xff]   ;;  %v2210_v11 = vld [vmem:[%s2163_s15 + $0x50] ss:$8 sps:$4 sm:$0xff]   ;;  %518 = vmatprep.subr.bf16.mxu0 %v2216_v13  ;;  %v2264_v57 = vld [vmem:[%s2163_s15 + $0x34] ss:$8 sps:$4 sm:$0xff]  }
  0x73   : > { %606 = vxpose.xlu1.c.b16.cont [2/8] %v2178_v3, 128  ;;  %v2213_v12 = vld [vmem:[%s2163_s15 + $0xe0] ss:$8 sps:$4 sm:$0xff]   ;;  %v292_v22 = vld [vmem:[%s2156_s7 + $0x90] sm:$0xff]  ;;  %v293_v25 = vld [vmem:[%s2156_s7 + $0x98] sm:$0xff]  ;;  %s2644_s21 = scalar_lea.vmem [#allocation7], %s1271_s4  ;;  %s1309_s26 = sshll.u32 %s2628_s22, 7 }
  0x74   : > { %v2219_v14 = vld [vmem:[%s2163_s15 + $0x60] ss:$8 sps:$4 sm:$0xff]   ;;  %v575_v26 = vmul.f32 200.0, %v292_v22  ;;  %v276_v27 = vld [vmem:[%s2156_s7 + $0x10] sm:$0xff]  ;;  %v277_v28 = vld [vmem:[%s2156_s7 + $0x18] sm:$0xff]  ;;  %v576_v30 = vmul.f32 200.0, %v293_v25 }
  0x75   : > { %v290_v16 = vld [vmem:[%s2156_s7 + $0x80] sm:$0xff]  ;;  %v291_v17 = vld [vmem:[%s2156_s7 + $0x88] sm:$0xff]  ;;  %v559_v31 = vmul.f32 200.0, %v276_v27  ;;  %v560_v32 = vmul.f32 200.0, %v277_v28  ;;  %v296_v40 = vld [vmem:[%s2156_s7 + $0xb0] sm:$0xff]  ;;  %519 = vmatpush1.bf16.msra.mxu0 %v2178_v3  ;;  %s1149_s14 = sshll.u32 %s2644_s21, 4  ;;  %s2689_s14 = int_to_ptr.vmem [resolvable:$true] %s1149_s14 }
  0x76   : > { %639 = vxpose.xlu0.c.b16.cont [3/8] %v2182_v4, 128  ;;  %v573_v18 = vmul.f32 200.0, %v290_v16  ;;  %v574_v19 = vmul.f32 200.0, %v291_v17  ;;  %v274_v20 = vld [vmem:[%s2156_s7] sm:$0xff]  ;;  %v275_v21 = vld [vmem:[%s2156_s7 + $0x8] sm:$0xff]  ;;  %v297_v41 = vld [vmem:[%s2156_s7 + $0xb8] sm:$0xff]  ;;  %v598_v43 = vpack.c.bf16 %v576_v30, %v575_v26  ;;  %v579_v50 = vmul.f32 200.0, %v296_v40  ;;  %520 = vmatprep.subr.bf16.mxu0 %v2247_v44 }
  0x77   : > { %607 = vxpose.xlu1.c.b16.cont [3/8] %v2186_v5, 128  ;;  %v557_v23 = vmul.f32 200.0, %v274_v20  ;;  %v558_v24 = vmul.f32 200.0, %v275_v21  ;;  %v294_v33 = vld [vmem:[%s2156_s7 + $0xa0] sm:$0xff]  ;;  %v295_v34 = vld [vmem:[%s2156_s7 + $0xa8] sm:$0xff]  ;;  %v2244_v42 = vld [vmem:[%s2163_s15 + $0xf0] ss:$8 sps:$4 sm:$0xff]   ;;  %v590_v46 = vpack.c.bf16 %v560_v32, %v559_v31 }
  0x78   : > { %v597_v29 = vpack.c.bf16 %v574_v19, %v573_v18  ;;  %v278_v35 = vld [vmem:[%s2156_s7 + $0x20] sm:$0xff]  ;;  %v577_v37 = vmul.f32 200.0, %v294_v33  ;;  %v578_v38 = vmul.f32 200.0, %v295_v34  ;;  %v279_v39 = vld [vmem:[%s2156_s7 + $0x28] sm:$0xff]  ;;  %v2251_v45 = vld [vmem:[%s2163_s15 + $0x70] ss:$8 sps:$4 sm:$0xff]  }
  0x79   : > { %v589_v36 = vpack.c.bf16 %v558_v24, %v557_v23  ;;  %v561_v47 = vmul.f32 200.0, %v278_v35  ;;  %v562_v48 = vmul.f32 200.0, %v279_v39  ;;  %v580_v51 = vmul.f32 200.0, %v297_v41  ;;  %v280_v52 = vld [vmem:[%s2156_s7 + $0x30] sm:$0xff]  ;;  %v281_v53 = vld [vmem:[%s2156_s7 + $0x38] sm:$0xff]  ;;  %v298_v54 = vld [vmem:[%s2156_s7 + $0xc0] sm:$0xff]  ;;  %521 = vmatpush1.bf16.msra.mxu0 %v2186_v5 }
  0x7a   : > { %640 = vxpose.xlu0.c.b16.cont [4/8] %v2190_v6, 128  ;;  %1313 = vmatprep.subr.bf16.mxu1 %v597_v29  ;;  %v599_v49 = vpack.c.bf16 %v578_v38, %v577_v37  ;;  %v299_v55 = vld [vmem:[%s2156_s7 + $0xc8] sm:$0xff]  ;;  %v563_v59 = vmul.f32 200.0, %v280_v52  ;;  %v564_v60 = vmul.f32 200.0, %v281_v53  ;;  %v581_v62 = vmul.f32 200.0, %v298_v54  ;;  %v2268_v1 = vld [vmem:[%s2156_s7 + $0x40] sm:$0xff]  ;;  %v300_v16 = vld [vmem:[%s2156_s7 + $0xd0] sm:$0xff] }
  0x7b   : > { %608 = vxpose.xlu1.c.b16.cont [4/8] %v2194_v7, 128  ;;  %1314 = vmatpush3.bf16.msra.mxu1 %v589_v36  ;;  %v591_v58 = vpack.c.bf16 %v562_v48, %v561_v47  ;;  %v600_v61 = vpack.c.bf16 %v580_v51, %v579_v50  ;;  %v582_v63 = vmul.f32 200.0, %v299_v55  ;;  %v2271_v3 = vld [vmem:[%s2156_s7 + $0x48] sm:$0xff]  ;;  %v301_v17 = vld [vmem:[%s2156_s7 + $0xd8] sm:$0xff]  ;;  %v565_v20 = vmul.f32 200.0, %v2268_v1  ;;  %v2288_v25 = vld [vmem:[%s2156_s7 + $0x50] sm:$0xff]  ;;  %s2814_s6 = sld [smem:[#allocation13_spill]] }
  0x7c   : > { %1315 = vmatprep.subr.bf16.mxu1 %v598_v43  ;;  %522 = vmatprep.subr.bf16.mxu0 %v2264_v57  ;;  %v2278_v18 = vld [vmem:[%s2163_s15 + $0x94] ss:$8 sps:$4 sm:$0xff]   ;;  %v2282_v19 = vld [vmem:[%s2163_s15 + $0x44] ss:$8 sps:$4 sm:$0xff]   ;;  %v592_v5 = vpack.c.bf16 %v564_v60, %v563_v59  ;;  %v566_v21 = vmul.f32 200.0, %v2271_v3  ;;  %v583_v23 = vmul.f32 200.0, %v300_v16 }
  0x7d   : > { %v601_v22 = vpack.c.bf16 %v582_v63, %v581_v62  ;;  %v584_v24 = vmul.f32 200.0, %v301_v17  ;;  %v2291_v26 = vld [vmem:[%s2156_s7 + $0x58] sm:$0xff]  ;;  %523 = vmatpush1.bf16.msra.mxu0 %v2194_v7  ;;  %v2295_v27 = vld [vmem:[%s2156_s7 + $0xe0] sm:$0xff]  ;;  %v567_v30 = vmul.f32 200.0, %v2288_v25  ;;  %v2315_v36 = vld [vmem:[%s2156_s7 + $0x68] sm:$0xff]  ;;  %s1135_s27 = scalar_lea.sflag [#allocation4], %s2150_s9 }
  0x7e   : > { %641 = vxpose.xlu0.c.b16.cont [5/8] %v2198_v8, 128  ;;  %524 = vmatprep.subr.bf16.mxu0 %v2282_v19  ;;  %v2302_v28 = vld [vmem:[%s2163_s15 + $0xa4] ss:$8 sps:$4 sm:$0xff]   ;;  %v1595_v29 = vld [vmem:[%s2163_s15 + $0x54] ss:$8 sps:$4 sm:$0xff]   ;;  %v593_v7 = vpack.c.bf16 %v566_v21, %v565_v20  ;;  %v568_v31 = vmul.f32 200.0, %v2291_v26  ;;  %v585_v33 = vmul.f32 200.0, %v2295_v27 }
  0x7f   : > { %609 = vxpose.xlu1.c.b16.cont [5/8] %v2202_v9, 128  ;;  %1316 = vmatpush3.bf16.msra.mxu1 %v590_v46  ;;  %v602_v32 = vpack.c.bf16 %v584_v24, %v583_v23  ;;  %v2312_v35 = vld [vmem:[%s2156_s7 + $0x60] sm:$0xff]  ;;  %v2322_v37 = vld [vmem:[%s2156_s7 + $0xf8] sm:$0xff]  ;;  %v2333_v48 = vld [vmem:[%s2156_s7 + $0x70] sm:$0xff]  ;;  %s1890_s12 = smov [#allocation7]  }
  0x80   : > { %1317 = vmatprep.subr.bf16.mxu1 %v599_v49  ;;  %2810 = vst [vmem:[#allocation15_spill] sm:$0xff] %v2322_v37  ;;  %v1580_v38 = vld [vmem:[%s2163_s15 + $0xb4] ss:$8 sps:$4 sm:$0xff]   ;;  %v1601_v39 = vld [vmem:[%s2163_s15 + $0x64] ss:$8 sps:$4 sm:$0xff]   ;;  %v594_v40 = vpack.c.bf16 %v568_v31, %v567_v30  ;;  %v569_v41 = vmul.f32 200.0, %v2312_v35 }
  0x81   : > { %525 = vmatpush1.bf16.msra.mxu0 %v2202_v9  ;;  %v570_v9 = vmul.f32 200.0, %v2315_v36  ;;  %v588_v47 = vmul.f32 200.0, %v2322_v37  ;;  %v2336_v49 = vld [vmem:[%s2156_s7 + $0x78] sm:$0xff]  ;;  %v571_v52 = vmul.f32 200.0, %v2333_v48  ;;  %p2815_p11 = scmp.ne.s32.totalorder %s2814_s6, 0  ;;  %s1760_s8 = sshll.u32 %s1890_s12, 4  ;;  %s1761_s8 = int_to_ptr.vmem [resolvable:$false] %s1760_s8 }
  0x82   : > { %642 = vxpose.xlu0.c.b16.cont [6/8] %v2206_v10, 128  ;;  %526 = vmatprep.subr.bf16.mxu0 %v1595_v29  ;;  %v1607_v50 = vld [vmem:[%s2163_s15 + $0x74] ss:$8 sps:$4 sm:$0xff]   ;;  %v572_v53 = vmul.f32 200.0, %v2336_v49  ;;  %s1762_s10 = scalar_lea.vmem %s1761_s8, 8192  ;;  %p1763_p4 = scmp.lt.s32.totalorder %s2689_s14, %s1761_s8 }
  0x83   : > { %610 = vxpose.xlu1.c.b16.cont [6/8] %v2210_v11, 128  ;;  %1318 = vmatpush3.bf16.msra.mxu1 %v591_v58  ;;  %v595_v51 = vpack.c.bf16 %v570_v9, %v569_v41 }
  0x84   : > { %1319 = vmatprep.subr.bf16.mxu1 %v600_v61  ;;  %v596_v55 = vpack.c.bf16 %v572_v53, %v571_v52 }
  0x85   : > { %527 = vmatpush1.bf16.msra.mxu0 %v2210_v11  ;;  %v1592_v11 = vld [vmem:[%s2163_s15 + $0xd4] ss:$8 sps:$4 sm:$0xff]  }
  0x86   : > { %643 = vxpose.xlu0.c.b16.cont [7/8] %v2213_v12, 128  ;;  %528 = vmatprep.subr.bf16.mxu0 %v1601_v39 }
  0x87   : > { %611 = vxpose.xlu1.c.b16.cont [7/8] %v2219_v14, 128  ;;  %1320 = vmatpush3.bf16.msra.mxu1 %v592_v5 }
  0x88   : > { %1321 = vmatprep.subr.bf16.mxu1 %v601_v22 }
  0x89   : > { %529 = vmatpush1.bf16.msra.mxu0 %v2219_v14  ;;  %v1604_v14 = vld [vmem:[%s2163_s15 + $0xf4] ss:$8 sps:$4 sm:$0xff]  }
  0x8a   : > { %644 = vxpose.xlu0.c.b16.end [8/8] %v2244_v42, 128  ;;  %530 = vmatprep.subr.bf16.mxu0 %v1607_v50 }
  0x8b   : > { %612 = vxpose.xlu1.c.b16.end [8/8] %v2251_v45, 128  ;;  %1322 = vmatpush3.bf16.msra.mxu1 %v593_v7 }
  0x8c   : > { %1323 = vmatprep.subr.bf16.mxu1 %v602_v32 }
  0x8d   : > { %531 = vmatpush1.bf16.msra.mxu0 %v2251_v45 }
  0x8e   : > { %653 = vxpose.xlu0.c.b16.start [1/8] %v2261_v56, 128  ;;  %532 = vmatprep.subr.bf16.mxu0 %v2261_v56 }
  0x8f   : > { %621 = vxpose.xlu1.c.b16.start [1/8] %v2222_v15, 128  ;;  %v2298_v15 = vld [vmem:[%s2156_s7 + $0xe8] sm:$0xff]  ;;  %1324 = vmatpush3.bf16.msra.mxu1 %v594_v40 }
  0x90   : > { %v586_v34 = vmul.f32 200.0, %v2298_v15 }
  0x91   : > { %533 = vmatpush1.bf16.msra.mxu0 %v2170_v0  ;;  %v1274_v0 = vld.sshfl [vmem:[%s2770_s2] sm:$0x33 pattern:$0x76325410] }
  0x92   : > { %654 = vxpose.xlu0.c.b16.cont [2/8] %v2278_v18, 128  ;;  %v603_v43 = vpack.c.bf16 %v586_v34, %v585_v33  ;;  %534 = vmatprep.subr.bf16.mxu0 %v2278_v18 }
  0x93   : > { %622 = vxpose.xlu1.c.b16.cont [2/8] %v2216_v13, 128  ;;  %v2319_v13 = vld [vmem:[%s2156_s7 + $0xf0] sm:$0xff] }
  0x94   : > { %v587_v46 = vmul.f32 200.0, %v2319_v13  ;;  %1325 = vmatprep.subr.bf16.mxu1 %v603_v43 }
  0x95   : > { %1326 = vmatpush3.bf16.msra.mxu1 %v595_v51  ;;  %535 = vmatpush1.bf16.msra.mxu0 %v2175_v2  ;;  %v353_v2 = vcombine.high %v1274_v0, %v1274_v0 }
  0x96   : > { %655 = vxpose.xlu0.c.b16.cont [3/8] %v2302_v28, 128  ;;  %v604_v54 = vpack.c.bf16 %v588_v47, %v587_v46  ;;  %536 = vmatprep.subr.bf16.mxu0 %v2302_v28 }
  0x97   : > { %623 = vxpose.xlu1.c.b16.cont [3/8] %v2247_v44, 128  ;;  %v1586_v44 = vld [vmem:[%s2163_s15 + $0xc4] ss:$8 sps:$4 sm:$0xff]   ;;  %548 = vmatprep.mubr.bf16.mxu0 %v353_v2 }
  0x98   : > { %1327 = vmatprep.subr.bf16.mxu1 %v604_v54 }
  0x99   : > { %1328 = vmatpush3.bf16.msra.mxu1 %v596_v55  ;;  %537 = vmatpush1.bf16.msra.mxu0 %v2182_v4 }
  0x9a   : > { %656 = vxpose.xlu0.c.b16.cont [4/8] %v1580_v38, 128  ;;  %538 = vmatprep.subr.bf16.mxu0 %v1580_v38  ;;  %v1889_v38 = vmov 0  }
  0x9b   : > { %624 = vxpose.xlu1.c.b16.cont [4/8] %v2264_v57, 128  ;;  %v1598_v57 = vld [vmem:[%s2163_s15 + $0xe4] ss:$8 sps:$4 sm:$0xff]   ;;  %s1756_s15 = scalar_lea.vmem %s2689_s14, 4096 }
  0x9c   : > { %p1757_p7 = scmp.ne.s32.totalorder %s2689_s14, %s1756_s15  ;;  %p1764_p3 = scmp.lt.s32.totalorder %s1762_s10, %s1756_s15 }
  0x9d   : > { %539 = vmatpush1.bf16.msra.mxu0 %v2190_v6 }
  0x9e   : > { %657 = vxpose.xlu0.c.b16.cont [5/8] %v1586_v44, 128  ;;  %540 = vmatprep.subr.bf16.mxu0 %v1586_v44  ;;  %p1758_p5 = pnand %p1757_p7, %p2815_p11  ;;  %p1765_p2 = por %p1764_p3, %p1763_p4 }
  0x9f   : > { %625 = vxpose.xlu1.c.b16.cont [5/8] %v2282_v19, 128 }
  0xa0   : > { %p1759_p12 = pneg %p1758_p5 }
  0xa1   : > { %541 = vmatpush1.bf16.msra.mxu0 %v2198_v8 }
  0xa2   : > { %658 = vxpose.xlu0.c.b16.cont [6/8] %v1592_v11, 128  ;;  %542 = vmatprep.subr.bf16.mxu0 %v1592_v11  ;;  %p1766_p9 = pnand %p1765_p2, %p1759_p12 }
  0xa3   : > { %626 = vxpose.xlu1.c.b16.cont [6/8] %v1595_v29, 128 }
  0xa5   : > { %543 = vmatpush1.bf16.msra.mxu0 %v2206_v10 }
  0xa6   : > { %659 = vxpose.xlu0.c.b16.cont [7/8] %v1598_v57, 128  ;;  %544 = vmatprep.subr.bf16.mxu0 %v1598_v57 }
  0xa7   : > { %627 = vxpose.xlu1.c.b16.cont [7/8] %v1601_v39, 128  ;;  %v339_v39 = vld [vmem:[%s2771_s3] sm:$0x7] }
  0xa9   : > { %545 = vmatpush1.bf16.msra.mxu0 %v2213_v12 }
  0xaa   : > { %660 = vxpose.xlu0.c.b16.end [8/8] %v1604_v14, 128  ;;  %546 = vmatprep.subr.bf16.mxu0 %v1604_v14 }
  0xab   : > { %628 = vxpose.xlu1.c.b16.end [8/8] %v1607_v50, 128 }
  0xad   : > { %547 = vmatpush1.bf16.msra.mxu0 %v2244_v42 }
  0xb0   : > { %549 = vmatmul.mubr.bf16.vlgmr.msra.gmra.mrb[0].mxu0 %v1274_v0 }
  0xb3   : > { %1561 = vset.pattern.permute.xlu0 %v1889_v38 }
  0xb4   : > { %342 = vperm.xlu0 %1561, %v339_v39  }
  0xd4   : > { %v645_v4 = vpop.trf.xlu0 }
  0xd5   : > { %701 = vmatprep.mubr.bf16.mxu1 %v645_v4  ;;  %v613_v6 = vpop.trf.xlu1 }
  0xd6   : > { %702 = vmatmul.mubr.bf16.vlgmr.msra.gmra.mrb[0].mxu1 %v613_v6 }
  0xd8   : > { %v646_v8 = vpop.trf.xlu0 }
  0xd9   : > { %709 = vmatprep.mubr.bf16.mxu1 %v646_v8  ;;  %v614_v10 = vpop.trf.xlu1 }
  0xdc   : > { %v647_v45 = vpop.trf.xlu0 }
  0xdd   : > { %v615_v12 = vpop.trf.xlu1 }
  0xde   : > { %710 = vmatmul.mubr.bf16.gmra.mrb[4].mxu1 %v614_v10 }
  0xdf   : > { %717 = vmatprep.mubr.bf16.mxu1 %v647_v45 }
  0xe0   : > { %v648_v56 = vpop.trf.xlu0 }
  0xe1   : > { %v616_v42 = vpop.trf.xlu1 }
  0xe4   : > { %v649_v58 = vpop.trf.xlu0 }
  0xe5   : > { %v617_v59 = vpop.trf.xlu1 }
  0xe6   : > { %718 = vmatmul.mubr.bf16.gmra.mrb[8].mxu1 %v615_v12 }
  0xe7   : > { %725 = vmatprep.mubr.bf16.mxu1 %v648_v56 }
  0xe8   : > { %v650_v60 = vpop.trf.xlu0 }
  0xe9   : > { %v618_v61 = vpop.trf.xlu1 }
  0xec   : > { %v651_v62 = vpop.trf.xlu0 }
  0xed   : > { %v619_v63 = vpop.trf.xlu1 }
  0xee   : > { %726 = vmatmul.mubr.bf16.gmra.mrb[12].mxu1 %v616_v42 }
  0xef   : > { %733 = vmatprep.mubr.bf16.mxu1 %v649_v58 }
  0xf0   : > { %v652_v16 = vpop.trf.xlu0 }
  0xf1   : > { %v620_v17 = vpop.trf.xlu1 }
  0xf4   : > { %v661_v18 = vpop.trf.xlu0 }
  0xf5   : > { %v629_v19 = vpop.trf.xlu1 }
  0xf6   : > { %734 = vmatmul.mubr.bf16.gmra.mrb[16].mxu1 %v617_v59 }
  0xf7   : > { %741 = vmatprep.mubr.bf16.mxu1 %v650_v60 }
  0xf8   : > { %v662_v5 = vpop.trf.xlu0 }
  0xf9   : > { %v630_v20 = vpop.trf.xlu1 }
  0xfc   : > { %v663_v21 = vpop.trf.xlu0 }
  0xfd   : > { %v631_v22 = vpop.trf.xlu1 }
  0xfe   : > { %742 = vmatmul.mubr.bf16.gmra.mrb[20].mxu1 %v618_v61 }
  0xff   : > { %749 = vmatprep.mubr.bf16.mxu1 %v651_v62 }
 0x100   : > { %v664_v23 = vpop.trf.xlu0 }
 0x101   : > { %v632_v24 = vpop.trf.xlu1 }
 0x104   : > { %v665_v28 = vpop.trf.xlu0 }
 0x105   : > { %v633_v29 = vpop.trf.xlu1 }
 0x106   : > { %750 = vmatmul.mubr.bf16.gmra.mrb[24].mxu1 %v619_v63 }
 0x107   : > { %757 = vmatprep.mubr.bf16.mxu1 %v652_v16 }
 0x108   : > { %v666_v7 = vpop.trf.xlu0 }
 0x109   : > { %v634_v30 = vpop.trf.xlu1 }
 0x10c   : > { %v667_v31 = vpop.trf.xlu0 }
 0x10d   : > { %v635_v32 = vpop.trf.xlu1 }
 0x10e   : > { %758 = vmatmul.mubr.bf16.gmra.mrb[28].mxu1 %v620_v17 }
 0x10f   : > { %765 = vmatprep.mubr.bf16.mxu1 %v661_v18 }
 0x110   : > { %v668_v33 = vpop.trf.xlu0 }
 0x111   : > { %v636_v34 = vpop.trf.xlu1 }
 0x116   : > { %766 = vmatmul.mubr.bf16.gmra.mrb[32].mxu1 %v629_v19 }
 0x117   : > { %773 = vmatprep.mubr.bf16.mxu1 %v662_v5 }
 0x11e   : > { %774 = vmatmul.mubr.bf16.gmra.mrb[36].mxu1 %v630_v20 }
 0x11f   : > { %781 = vmatprep.mubr.bf16.mxu1 %v663_v21 }
 0x126   : > { %782 = vmatmul.mubr.bf16.gmra.mrb[40].mxu1 %v631_v22 }
 0x127   : > { %789 = vmatprep.mubr.bf16.mxu1 %v664_v23 }
 0x12e   : > { %790 = vmatmul.mubr.bf16.gmra.mrb[44].mxu1 %v632_v24 }
 0x12f   : > { %797 = vmatprep.mubr.bf16.mxu1 %v665_v28 }
 0x136   : > { %798 = vmatmul.mubr.bf16.gmra.mrb[48].mxu1 %v633_v29 }
 0x137   : > { %805 = vmatprep.mubr.bf16.mxu1 %v666_v7 }
 0x13e   : > { %806 = vmatmul.mubr.bf16.gmra.mrb[52].mxu1 %v634_v30 }
 0x13f   : > { %813 = vmatprep.mubr.bf16.mxu1 %v667_v31 }
 0x146   : > { %814 = vmatmul.mubr.bf16.gmra.mrb[56].mxu1 %v635_v32 }
 0x147   : > { %821 = vmatprep.mubr.bf16.mxu1 %v668_v33 }
 0x14e   : > { %822 = vmatmul.mubr.bf16.gmra.mrb[60].mxu1 %v636_v34 }
 0x1a9   : > { %v1329_v40 = vpop.f32.mrb[0].mxu1 }
 0x1aa   : > { %v1330_v41 = vpop.f32.mrb[1].mxu1 }
 0x1ab   : > { %v2367_v9 = vadd.f32 %v1330_v41, %v1329_v40  ;;  %v1332_v43 = vpop.f32.mrb[2].mxu1 }
 0x1ac   : > { %v1333_v46 = vpop.f32.mrb[3].mxu1 }
 0x1ad   : > { %v2369_v47 = vadd.f32 %v1333_v46, %v1332_v43 }
 0x1b1   : > { %v1335_v44 = vpop.f32.mrb[4].mxu1 }
 0x1b2   : > { %v1336_v50 = vpop.f32.mrb[5].mxu1 }
 0x1b3   : > { %v2371_v51 = vadd.f32 %v1336_v50, %v1335_v44  ;;  %v1338_v52 = vpop.f32.mrb[6].mxu1 }
 0x1b4   : > { %v1339_v53 = vpop.f32.mrb[7].mxu1 }
 0x1b5   : > { %v2373_v54 = vadd.f32 %v1339_v53, %v1338_v52 }
 0x1b9   : > { %v1341_v11 = vpop.f32.mrb[8].mxu1 }
 0x1ba   : > { %v1342_v55 = vpop.f32.mrb[9].mxu1 }
 0x1bb   : > { %v2375_v57 = vadd.f32 %v1342_v55, %v1341_v11  ;;  %v1344_v14 = vpop.f32.mrb[10].mxu1 }
 0x1bc   : > { %v1345_v0 = vpop.f32.mrb[11].mxu1 }
 0x1bd   : > { %v830_v2 = vmax.f32 %v2367_v9, %v2375_v57  ;;  %v2379_v4 = vadd.f32 %v1345_v0, %v1344_v14 }
 0x1bf   : > { %v831_v6 = vmax.f32 %v2369_v47, %v2379_v4 }
 0x1c1   : > { %v1347_v8 = vpop.f32.mrb[12].mxu1 }
 0x1c2   : > { %v1348_v10 = vpop.f32.mrb[13].mxu1 }
 0x1c3   : > { %v2383_v45 = vadd.f32 %v1348_v10, %v1347_v8  ;;  %v1350_v12 = vpop.f32.mrb[14].mxu1 }
 0x1c4   : > { %v1351_v56 = vpop.f32.mrb[15].mxu1 }
 0x1c5   : > { %v832_v42 = vmax.f32 %v2371_v51, %v2383_v45  ;;  %v2387_v58 = vadd.f32 %v1351_v56, %v1350_v12 }
 0x1c7   : > { %v833_v59 = vmax.f32 %v2373_v54, %v2387_v58 }
 0x1c9   : > { %v1353_v60 = vpop.f32.mrb[16].mxu1 }
 0x1ca   : > { %v1354_v61 = vpop.f32.mrb[17].mxu1 }
 0x1cb   : > { %v2391_v62 = vadd.f32 %v1354_v61, %v1353_v60  ;;  %v1356_v63 = vpop.f32.mrb[18].mxu1 }
 0x1cc   : > { %v1357_v16 = vpop.f32.mrb[19].mxu1 }
 0x1cd   : > { %v834_v17 = vmax.f32 %v830_v2, %v2391_v62  ;;  %v2394_v18 = vadd.f32 %v1357_v16, %v1356_v63  ;;  %v550_v16 = vpop.f32.mrb[0].mxu0 }
 0x1cf   : > { %v835_v19 = vmax.f32 %v831_v6, %v2394_v18 }
 0x1d1   : > { %v1359_v5 = vpop.f32.mrb[20].mxu1 }
 0x1d2   : > { %v1360_v20 = vpop.f32.mrb[21].mxu1 }
 0x1d3   : > { %v2397_v21 = vadd.f32 %v1360_v20, %v1359_v5  ;;  %v1362_v22 = vpop.f32.mrb[22].mxu1  ;;  %v343_v5 = vpop.permute.xlu0 %342 }
 0x1d4   : > { %v1363_v23 = vpop.f32.mrb[23].mxu1 }
 0x1d5   : > { %v836_v24 = vmax.f32 %v832_v42, %v2397_v21  ;;  %v2400_v28 = vadd.f32 %v1363_v23, %v1362_v22  ;;  %v2427_v22 = vadd.f32 %v550_v16, %v343_v5 }
 0x1d7   : > { %v837_v29 = vmax.f32 %v833_v59, %v2400_v28 }
 0x1d9   : > { %v1365_v7 = vpop.f32.mrb[24].mxu1 }
 0x1da   : > { %v1366_v30 = vpop.f32.mrb[25].mxu1 }
 0x1db   : > { %v2403_v31 = vadd.f32 %v1366_v30, %v1365_v7  ;;  %v1368_v32 = vpop.f32.mrb[26].mxu1 }
 0x1dc   : > { %v1369_v33 = vpop.f32.mrb[27].mxu1 }
 0x1dd   : > { %v838_v34 = vmax.f32 %v834_v17, %v2403_v31  ;;  %v2406_v38 = vadd.f32 %v1369_v33, %v1368_v32 }
 0x1df   : > { %v839_v39 = vmax.f32 %v835_v19, %v2406_v38  ;;  %v552_v19 = vpop.f32.mrb[1].mxu0 }
 0x1e0   : > { %v554_v20 = vpop.f32.mrb[2].mxu0  ;;  %v553_v23 = vadd.f32 %v552_v19, %v343_v5 }
 0x1e1   : > { %v1371_v40 = vpop.f32.mrb[28].mxu1 }
 0x1e2   : > { %v1372_v41 = vpop.f32.mrb[29].mxu1  ;;  %v980_v30 = vpack.c.bf16 %v553_v23, %v553_v23 }
 0x1e3   : > { %v2409_v43 = vadd.f32 %v1372_v41, %v1371_v40  ;;  %v1374_v46 = vpop.f32.mrb[30].mxu1 }
 0x1e4   : > { %v1375_v44 = vpop.f32.mrb[31].mxu1  ;;  %1013 = vmatprep.mubr.bf16.mxu0 %v980_v30 }
 0x1e5   : > { %v840_v50 = vmax.f32 %v836_v24, %v2409_v43  ;;  %v2412_v52 = vadd.f32 %v1375_v44, %v1374_v46 }
 0x1e7   : > { %v841_v53 = vmax.f32 %v837_v29, %v2412_v52  ;;  %v555_v29 = vpop.f32.mrb[3].mxu0 }
 0x1e9   : > { %v1377_v11 = vpop.f32.mrb[32].mxu1 }
 0x1ea   : > { %v1378_v55 = vpop.f32.mrb[33].mxu1 }
 0x1eb   : > { %v2415_v14 = vadd.f32 %v1378_v55, %v1377_v11  ;;  %v1380_v0 = vpop.f32.mrb[34].mxu1 }
 0x1ec   : > { %v1381_v2 = vpop.f32.mrb[35].mxu1 }
 0x1ed   : > { %v842_v6 = vmax.f32 %v838_v34, %v2415_v14  ;;  %v2418_v8 = vadd.f32 %v1381_v2, %v1380_v0 }
 0x1ef   : > { %v843_v10 = vmax.f32 %v839_v39, %v2418_v8 }
 0x1f1   : > { %v1383_v12 = vpop.f32.mrb[36].mxu1 }
 0x1f2   : > { %v1384_v56 = vpop.f32.mrb[37].mxu1 }
 0x1f3   : > { %v2421_v42 = vadd.f32 %v1384_v56, %v1383_v12  ;;  %v1386_v59 = vpop.f32.mrb[38].mxu1 }
 0x1f4   : > { %v1387_v60 = vpop.f32.mrb[39].mxu1 }
 0x1f5   : > { %v844_v61 = vmax.f32 %v840_v50, %v2421_v42  ;;  %v2424_v63 = vadd.f32 %v1387_v60, %v1386_v59 }
 0x1f7   : > { %v845_v17 = vmax.f32 %v841_v53, %v2424_v63 }
 0x1f9   : > { %v1389_v24 = vpop.f32.mrb[40].mxu1 }
 0x1fa   : > { %v1390_v7 = vpop.f32.mrb[41].mxu1 }
 0x1fb   : > { %v2429_v32 = vadd.f32 %v1390_v7, %v1389_v24  ;;  %v1392_v33 = vpop.f32.mrb[42].mxu1 }
 0x1fc   : > { %v1393_v34 = vpop.f32.mrb[43].mxu1 }
 0x1fd   : > { %v846_v39 = vmax.f32 %v842_v6, %v2429_v32  ;;  %v2432_v40 = vadd.f32 %v1393_v34, %v1392_v33 }
 0x1ff   : > { %v847_v41 = vmax.f32 %v843_v10, %v2432_v40 }
 0x201   : > { %v1395_v46 = vpop.f32.mrb[44].mxu1 }
 0x202   : > { %v1396_v44 = vpop.f32.mrb[45].mxu1 }
 0x203   : > { %v2435_v50 = vadd.f32 %v1396_v44, %v1395_v46  ;;  %v1398_v53 = vpop.f32.mrb[46].mxu1 }
 0x204   : > { %v1399_v11 = vpop.f32.mrb[47].mxu1 }
 0x205   : > { %v848_v55 = vmax.f32 %v844_v61, %v2435_v50  ;;  %v2438_v0 = vadd.f32 %v1399_v11, %v1398_v53 }
 0x207   : > { %v849_v2 = vmax.f32 %v845_v17, %v2438_v0 }
 0x209   : > { %v1401_v12 = vpop.f32.mrb[48].mxu1 }
 0x20a   : > { %v1402_v56 = vpop.f32.mrb[49].mxu1 }
 0x20b   : > { %v2441_v59 = vadd.f32 %v1402_v56, %v1401_v12  ;;  %v1404_v6 = vpop.f32.mrb[50].mxu1 }
 0x20c   : > { %v1405_v60 = vpop.f32.mrb[51].mxu1 }
 0x20d   : > { %v850_v10 = vmax.f32 %v846_v39, %v2441_v59  ;;  %v2444_v16 = vadd.f32 %v1405_v60, %v1404_v6 }
 0x20f   : > { %v851_v19 = vmax.f32 %v847_v41, %v2444_v16 }
 0x211   : > { %v1407_v5 = vpop.f32.mrb[52].mxu1 }
 0x212   : > { %v1408_v20 = vpop.f32.mrb[53].mxu1 }
 0x213   : > { %v2447_v23 = vadd.f32 %v1408_v20, %v1407_v5  ;;  %v1410_v61 = vpop.f32.mrb[54].mxu1 }
 0x214   : > { %v1411_v24 = vpop.f32.mrb[55].mxu1 }
 0x215   : > { %v852_v17 = vmax.f32 %v848_v55, %v2447_v23  ;;  %v2450_v29 = vadd.f32 %v1411_v24, %v1410_v61 }
 0x217   : > { %v853_v7 = vmax.f32 %v849_v2, %v2450_v29 }
 0x219   : > { %v1413_v30 = vpop.f32.mrb[56].mxu1 }
 0x21a   : > { %v1414_v33 = vpop.f32.mrb[57].mxu1 }
 0x21b   : > { %v2453_v34 = vadd.f32 %v1414_v33, %v1413_v30  ;;  %v1416_v39 = vpop.f32.mrb[58].mxu1 }
 0x21c   : > { %v1417_v46 = vpop.f32.mrb[59].mxu1 }
 0x21d   : > { %v854_v41 = vmax.f32 %v850_v10, %v2453_v34  ;;  %v2456_v44 = vadd.f32 %v1417_v46, %v1416_v39 }
 0x21f   : > { %v855_v53 = vmax.f32 %v851_v19, %v2456_v44 }
 0x221   : > { %v858_v11 = vmax.f32 %v854_v41, %v855_v53  ;;  %v1419_v12 = vpop.f32.mrb[60].mxu1 }
 0x222   : > { %v1420_v56 = vpop.f32.mrb[61].mxu1 }
 0x223   : > { %v2459_v55 = vadd.f32 %v1420_v56, %v1419_v12  ;;  %v1422_v6 = vpop.f32.mrb[62].mxu1 }
 0x224   : > { %v1423_v60 = vpop.f32.mrb[63].mxu1 }
 0x225   : > { %v856_v2 = vmax.f32 %v852_v17, %v2459_v55  ;;  %v1424_v5 = vadd.f32 %v1423_v60, %v1422_v6 }
 0x227   : > { %v857_v20 = vmax.f32 %v853_v7, %v1424_v5 }
 0x229   : > { %v859_v61 = vmax.f32 %v856_v2, %v857_v20 }
 0x22b   : > { %v860_v24 = vmax.f32 %v858_v11, %v859_v61 }
 0x22d   : > { %v861_v30 = vrot.slane %v860_v24, 4 }
 0x22f   : > { %v862_v33 = vmax.f32 %v860_v24, %v861_v30 }
 0x231   : > { %v863_v10 = vrot.slane %v862_v33, 2 }
 0x233   : > { %v864_v39 = vmax.f32 %v862_v33, %v863_v10 }
 0x235   : > { %v865_v46 = vrot.slane %v864_v39, 1 }
 0x237   : > { %v2462_v37 = vmax.f32 %v864_v39, %v865_v46 }
 0x239   : > { %v898_v19 = vsub.f32 %v1424_v5, %v2462_v37  ;;  %v867_v41 = vsub.f32 %v2367_v9, %v2462_v37  ;;  %v868_v53 = vsub.f32 %v2369_v47, %v2462_v37  ;;  %v869_v17 = vsub.f32 %v2371_v51, %v2462_v37 }
 0x23a   : > { %v870_v7 = vsub.f32 %v2373_v54, %v2462_v37  ;;  %v871_v11 = vsub.f32 %v2375_v57, %v2462_v37  ;;  %v872_v12 = vsub.f32 %v2379_v4, %v2462_v37  ;;  %v873_v56 = vsub.f32 %v2383_v45, %v2462_v37 }
 0x23b   : > { %v874_v9 = vsub.f32 %v2387_v58, %v2462_v37  ;;  %v875_v47 = vsub.f32 %v2391_v62, %v2462_v37  ;;  %v876_v51 = vsub.f32 %v2394_v18, %v2462_v37  ;;  %v877_v54 = vsub.f32 %v2397_v21, %v2462_v37 }
 0x23c   : > { %v878_v57 = vsub.f32 %v2400_v28, %v2462_v37  ;;  %v879_v4 = vsub.f32 %v2403_v31, %v2462_v37  ;;  %v880_v45 = vsub.f32 %v2406_v38, %v2462_v37  ;;  %v961_v6 = vmul.f32 1.442695, %v898_v19 }
 0x23d   : > { %v881_v58 = vsub.f32 %v2409_v43, %v2462_v37  ;;  %v882_v62 = vsub.f32 %v2412_v52, %v2462_v37  ;;  %v883_v18 = vsub.f32 %v2415_v14, %v2462_v37  ;;  %v884_v21 = vsub.f32 %v2418_v8, %v2462_v37 }
 0x23e   : > { %v885_v28 = vsub.f32 %v2421_v42, %v2462_v37  ;;  %v886_v31 = vsub.f32 %v2424_v63, %v2462_v37  ;;  %v887_v38 = vsub.f32 %v2429_v32, %v2462_v37  ;;  %v888_v43 = vsub.f32 %v2432_v40, %v2462_v37 }
 0x23f   : > { %v889_v52 = vsub.f32 %v2435_v50, %v2462_v37  ;;  %v890_v14 = vsub.f32 %v2438_v0, %v2462_v37  ;;  %v891_v8 = vsub.f32 %v2441_v59, %v2462_v37  ;;  %v892_v42 = vsub.f32 %v2444_v16, %v2462_v37 }
 0x240   : > { %v893_v63 = vsub.f32 %v2447_v23, %v2462_v37  ;;  %v894_v32 = vsub.f32 %v2450_v29, %v2462_v37  ;;  %v895_v40 = vsub.f32 %v2453_v34, %v2462_v37  ;;  %v897_v2 = vsub.f32 %v2459_v55, %v2462_v37 }
 0x241   : > { %v899_v5 = vmul.f32 1.442695, %v867_v41  ;;  %v901_v20 = vmul.f32 1.442695, %v868_v53  ;;  %1610 = vpow2.f32 %v961_v6  ;;  %v903_v61 = vmul.f32 1.442695, %v869_v17 }
 0x242   : > { %v905_v24 = vmul.f32 1.442695, %v870_v7  ;;  %v907_v30 = vmul.f32 1.442695, %v871_v11  ;;  %v909_v33 = vmul.f32 1.442695, %v872_v12  ;;  %v2811_v23 = vsub.f32 %v2456_v44, %v2462_v37 }
 0x243   : > { %1612 = vpow2.f32 %v899_v5  ;;  %v911_v10 = vmul.f32 1.442695, %v873_v56  ;;  %v913_v39 = vmul.f32 1.442695, %v874_v9  ;;  %v915_v46 = vmul.f32 1.442695, %v875_v47 }
 0x244   : > { %1614 = vpow2.f32 %v901_v20  ;;  %v917_v19 = vmul.f32 1.442695, %v876_v51  ;;  %v919_v60 = vmul.f32 1.442695, %v877_v54  ;;  %v921_v41 = vmul.f32 1.442695, %v878_v57 }
 0x245   : > { %1616 = vpow2.f32 %v903_v61  ;;  %v923_v53 = vmul.f32 1.442695, %v879_v4  ;;  %v925_v7 = vmul.f32 1.442695, %v880_v45  ;;  %v927_v12 = vmul.f32 1.442695, %v881_v58 }
 0x246   : > { %1618 = vpow2.f32 %v905_v24  ;;  %v929_v9 = vmul.f32 1.442695, %v882_v62  ;;  %v931_v51 = vmul.f32 1.442695, %v883_v18  ;;  %v933_v4 = vmul.f32 1.442695, %v884_v21 }
 0x247   : > { %1620 = vpow2.f32 %v907_v30  ;;  %v935_v6 = vmul.f32 1.442695, %v885_v28  ;;  %v937_v62 = vmul.f32 1.442695, %v886_v31  ;;  %v939_v18 = vmul.f32 1.442695, %v887_v38 }
 0x248   : > { %1622 = vpow2.f32 %v909_v33  ;;  %v941_v21 = vmul.f32 1.442695, %v888_v43  ;;  %v943_v28 = vmul.f32 1.442695, %v889_v52  ;;  %v945_v38 = vmul.f32 1.442695, %v890_v14 }
 0x249   : > { %1624 = vpow2.f32 %v911_v10  ;;  %v947_v43 = vmul.f32 1.442695, %v891_v8  ;;  %v949_v10 = vmul.f32 1.442695, %v892_v42  ;;  %v951_v0 = vmul.f32 1.442695, %v893_v63 }
 0x24a   : > { %1626 = vpow2.f32 %v913_v39  ;;  %v953_v59 = vmul.f32 1.442695, %v894_v32  ;;  %v955_v16 = vmul.f32 1.442695, %v895_v40  ;;  %v957_v63 = vmul.f32 1.442695, %v2811_v23 }
 0x24b   : > { %1628 = vpow2.f32 %v915_v46  ;;  %v2527_v17 = vpop.eup %1610  ;;  %v959_v29 = vmul.f32 1.442695, %v897_v2  ;;  %v1680_v23 = vld [vmem:[%s2156_s7 + $0x20] sm:$0xff] }
 0x24c   : > { %1630 = vpow2.f32 %v917_v19 }
 0x24d   : > { %v2529_v11 = vpop.eup %1612  ;;  %1632 = vpow2.f32 %v919_v60 }
 0x24e   : > { %v2531_v56 = vpop.eup %1614  ;;  %1634 = vpow2.f32 %v921_v41 }
 0x24f   : > { %v2533_v47 = vpop.eup %1616  ;;  %1636 = vpow2.f32 %v923_v53  ;;  %v963_v54 = vpack.c.bf16 %v2531_v56, %v2529_v11 }
 0x250   : > { %v2537_v57 = vpop.eup %1618  ;;  %1638 = vpow2.f32 %v925_v7 }
 0x251   : > { %v2539_v45 = vpop.eup %1620  ;;  %1640 = vpow2.f32 %v927_v12  ;;  %v964_v58 = vpack.c.bf16 %v2537_v57, %v2533_v47 }
 0x252   : > { %v2543_v60 = vpop.eup %1622  ;;  %1642 = vpow2.f32 %v929_v9 }
 0x253   : > { %v2545_v5 = vpop.eup %1624  ;;  %1644 = vpow2.f32 %v931_v51  ;;  %v965_v20 = vpack.c.bf16 %v2543_v60, %v2539_v45 }
 0x254   : > { %v2549_v61 = vpop.eup %1626  ;;  %1646 = vpow2.f32 %v933_v4 }
 0x255   : > { %v2551_v24 = vpop.eup %1628  ;;  %1648 = vpow2.f32 %v935_v6  ;;  %v966_v31 = vpack.c.bf16 %v2549_v61, %v2545_v5 }
 0x256   : > { %v2558_v30 = vpop.eup %1630  ;;  %1650 = vpow2.f32 %v937_v62 }
 0x257   : > { %v1633_v33 = vpop.eup %1632  ;;  %1652 = vpow2.f32 %v939_v18  ;;  %v967_v50 = vpack.c.bf16 %v2558_v30, %v2551_v24 }
 0x258   : > { %v1635_v52 = vpop.eup %1634  ;;  %1654 = vpow2.f32 %v941_v21 }
 0x259   : > { %v1637_v39 = vpop.eup %1636  ;;  %1656 = vpow2.f32 %v943_v28  ;;  %v968_v14 = vpack.c.bf16 %v1635_v52, %v1633_v33 }
 0x25a   : > { %v1639_v46 = vpop.eup %1638  ;;  %1658 = vpow2.f32 %v945_v38 }
 0x25b   : > { %v1641_v8 = vpop.eup %1640  ;;  %1660 = vpow2.f32 %v947_v43  ;;  %v969_v42 = vpack.c.bf16 %v1639_v46, %v1637_v39  ;;  %v1677_v46 = vld [vmem:[%s2156_s7 + $0x8] sm:$0xff] }
 0x25c   : > { %v1643_v19 = vpop.eup %1642  ;;  %1662 = vpow2.f32 %v949_v10 }
 0x25d   : > { %v1645_v41 = vpop.eup %1644  ;;  %1664 = vpow2.f32 %v951_v0  ;;  %v970_v32 = vpack.c.bf16 %v1643_v19, %v1641_v8  ;;  %v1676_v0 = vld [vmem:[%s2156_s7] sm:$0xff]  ;;  %v1678_v8 = vld [vmem:[%s2156_s7 + $0x10] sm:$0xff] }
 0x25e   : > { %v1647_v53 = vpop.eup %1646  ;;  %1666 = vpow2.f32 %v953_v59 }
 0x25f   : > { %v1649_v7 = vpop.eup %1648  ;;  %1668 = vpow2.f32 %v955_v16  ;;  %v971_v34 = vpack.c.bf16 %v1647_v53, %v1645_v41  ;;  %v1681_v41 = vld [vmem:[%s2156_s7 + $0x28] sm:$0xff] }
 0x260   : > { %v1651_v40 = vpop.eup %1650  ;;  %1670 = vpow2.f32 %v957_v63 }
 0x261   : > { %v1653_v11 = vpop.eup %1652  ;;  %1672 = vpow2.f32 %v959_v29  ;;  %1425 = vmatprep.subr.bf16.mxu0 %v971_v34  ;;  %v972_v12 = vpack.c.bf16 %v1651_v40, %v1649_v7  ;;  %v1683_v7 = vld [vmem:[%s2156_s7 + $0x38] sm:$0xff] }
 0x262   : > { %v1655_v44 = vpop.eup %1654  ;;  %1426 = vmatpush3.bf16.msra.mxu0 %v963_v54 }
 0x263   : > { %v1657_v56 = vpop.eup %1656  ;;  %1427 = vmatprep.subr.bf16.mxu0 %v972_v12  ;;  %v973_v9 = vpack.c.bf16 %v1655_v44, %v1653_v11 }
 0x264   : > { %v1659_v47 = vpop.eup %1658 }
 0x265   : > { %v1661_v37 = vpop.eup %1660  ;;  %v974_v55 = vpack.c.bf16 %v1659_v47, %v1657_v56 }
 0x266   : > { %v1663_v2 = vpop.eup %1662  ;;  %1428 = vmatpush3.bf16.msra.mxu0 %v964_v58  ;;  %v979_v58 = vpack.c.bf16 %v2427_v22, %v2427_v22 }
 0x267   : > { %v1665_v51 = vpop.eup %1664  ;;  %1429 = vmatprep.subr.bf16.mxu0 %v973_v9  ;;  %v975_v57 = vpack.c.bf16 %v1663_v2, %v1661_v37 }
 0x268   : > { %v1667_v4 = vpop.eup %1666 }
 0x269   : > { %v1669_v6 = vpop.eup %1668  ;;  %v976_v62 = vpack.c.bf16 %v1667_v4, %v1665_v51  ;;  %v1689_v4 = vld [vmem:[%s2156_s7 + $0xa8] sm:$0xff] }
 0x26a   : > { %v1671_v5 = vpop.eup %1670  ;;  %1430 = vmatpush3.bf16.msra.mxu0 %v965_v20 }
 0x26b   : > { %v1673_v54 = vpop.eup %1672  ;;  %1431 = vmatprep.subr.bf16.mxu0 %v974_v55  ;;  %v977_v18 = vpack.c.bf16 %v1671_v5, %v1669_v6  ;;  %v1690_v6 = vld [vmem:[%s2156_s7 + $0xb0] sm:$0xff] }
 0x26c   : > { %v978_v61 = vpack.c.bf16 %v2527_v17, %v1673_v54  ;;  %v1030_v17 = vlaneseq  ;;  %v1692_v54 = vld [vmem:[%s2156_s7 + $0xc0] sm:$0xff] }
 0x26e   : > { %1432 = vmatpush3.bf16.msra.mxu0 %v966_v31  ;;  %v1031_v31 = vshrl.u32 %v1030_v17, 7 }
 0x26f   : > { %1433 = vmatprep.subr.bf16.mxu0 %v975_v57 }
 0x270   : > { %v1032_v43 = vsub.s32 0, %v1031_v31 }
 0x272   : > { %1434 = vmatpush3.bf16.msra.mxu0 %v967_v50  ;;  %v1068_v50 = vsub.s32 1, %v1031_v31  ;;  %v2812_v31 = vld [vmem:[#allocation15_spill] sm:$0xff] }
 0x273   : > { %1435 = vmatprep.subr.bf16.mxu0 %v976_v62  ;;  %v1691_v62 = vld [vmem:[%s2156_s7 + $0xb8] sm:$0xff] }
 0x276   : > { %1436 = vmatpush3.bf16.msra.mxu0 %v968_v14 }
 0x277   : > { %1437 = vmatprep.subr.bf16.mxu0 %v977_v18 }
 0x27a   : > { %1438 = vmatpush3.bf16.msra.mxu0 %v969_v42  ;;  %v1679_v42 = vld [vmem:[%s2156_s7 + $0x18] sm:$0xff] }
 0x27b   : > { %1439 = vmatprep.subr.bf16.mxu0 %v978_v61  ;;  %v1693_v61 = vld [vmem:[%s2156_s7 + $0xc8] sm:$0xff] }
 0x27e   : > { %1440 = vmatpush3.bf16.msra.mxu0 %v970_v32  ;;  %v1682_v32 = vld [vmem:[%s2156_s7 + $0x30] sm:$0xff] }
 0x281   : > { %1014 = vmatmul.mubr.bf16.vlgmr.msra.gmra.mrb[4].mxu0 %v979_v58 }
 0x354   : > { %v1441_v45 = vpop.f32.mrb[4].mxu0 }
 0x355   : > { %v1442_v60 = vpop.f32.mrb[5].mxu0 }
 0x356   : > { %v1443_v20 = vadd.f32 %v1442_v60, %v1441_v45  ;;  %v1444_v21 = vpop.f32.mrb[6].mxu0  ;;  %v1694_v45 = vld [vmem:[%s2156_s7 + $0xd0] sm:$0xff] }
 0x357   : > { %v1445_v24 = vpop.f32.mrb[7].mxu0 }
 0x358   : > { %1674 = vrcp.f32 %v1443_v20 }
 0x362   : > { %v1675_v28 = vpop.eup %1674 }
 0x363   : > { %v1023_v30 = vrot.slane %v1675_v28, 2  ;;  %v1026_v38 = vrot.slane %v1675_v28, 1 }
 0x365   : > { %v1025_v33 = vmul.f32 %v1443_v20, %v1023_v30  ;;  %v1028_v22 = vmul.f32 %v1443_v20, %v1026_v38  ;;  %v1695_v20 = vld [vmem:[%s2156_s7 + $0xd8] sm:$0xff] }
 0x367   : > { %v1029_v52 = vadd.f32 1.0, %v1025_v33  ;;  %v2592_v39 = vrot.slane %v1028_v22, %v1068_v50 }
 0x369   : > { %v1033_v10 = vrot.slane %v1029_v52, %v1032_v43 }
 0x36b   : > { %v1034_v14 = vmul.f32 %v1676_v0, %v1033_v10  ;;  %v1035_v59 = vmul.f32 %v1677_v46, %v1033_v10  ;;  %v1036_v16 = vmul.f32 %v1678_v8, %v1033_v10  ;;  %v1037_v19 = vmul.f32 %v1679_v42, %v1033_v10 }
 0x36c   : > { %v1038_v63 = vmul.f32 %v1680_v23, %v1033_v10  ;;  %v1039_v29 = vmul.f32 %v1681_v41, %v1033_v10  ;;  %v1040_v53 = vmul.f32 %v1682_v32, %v1033_v10  ;;  %v1041_v34 = vmul.f32 %v1683_v7, %v1033_v10 }
 0x36d   : > { %v1042_v40 = vmul.f32 %v1033_v10, %v2268_v1  ;;  %v1043_v11 = vmul.f32 %v1033_v10, %v2271_v3  ;;  %v1044_v12 = vmul.f32 %v1033_v10, %v2288_v25  ;;  %v1045_v44 = vmul.f32 %v1033_v10, %v2291_v26  ;;  %v1684_v1 = vld [vmem:[%s2156_s7 + $0x80] sm:$0xff]  ;;  %v1685_v3 = vld [vmem:[%s2156_s7 + $0x88] sm:$0xff]  ;;  %v1686_v25 = vld [vmem:[%s2156_s7 + $0x90] sm:$0xff] }
 0x36e   : > { %v1046_v56 = vmul.f32 %v1033_v10, %v2312_v35  ;;  %v1047_v9 = vmul.f32 %v1033_v10, %v2315_v36  ;;  %v1048_v47 = vmul.f32 %v1033_v10, %v2333_v48  ;;  %v1049_v37 = vmul.f32 %v1033_v10, %v2336_v49  ;;  %v1687_v26 = vld [vmem:[%s2156_s7 + $0x98] sm:$0xff]  ;;  %v1688_v35 = vld [vmem:[%s2156_s7 + $0xa0] sm:$0xff]  ;;  %s2813_s7 = sld [smem:[#allocation16_spill]] }
 0x36f   : > { %v1050_v55 = vmul.f32 %v1684_v1, %v1033_v10  ;;  %v1051_v2 = vmul.f32 %v1685_v3, %v1033_v10  ;;  %v1052_v51 = vmul.f32 %v1686_v25, %v1033_v10  ;;  %v1053_v57 = vmul.f32 %v1687_v26, %v1033_v10 }
 0x370   : > { %v1054_v36 = vmul.f32 %v1688_v35, %v1033_v10  ;;  %v1055_v48 = vmul.f32 %v1689_v4, %v1033_v10  ;;  %v1056_v49 = vmul.f32 %v1690_v6, %v1033_v10  ;;  %v1057_v5 = vmul.f32 %v1691_v62, %v1033_v10 }
 0x371   : > { %v1058_v18 = vmul.f32 %v1692_v54, %v1033_v10  ;;  %v1059_v58 = vmul.f32 %v1693_v61, %v1033_v10  ;;  %v1060_v60 = vmul.f32 %v1694_v45, %v1033_v10  ;;  %v1061_v21 = vmul.f32 %v1695_v20, %v1033_v10 }
 0x372   : > { %v1062_v24 = vmul.f32 %v1033_v10, %v2295_v27  ;;  %v1063_v17 = vmul.f32 %v1033_v10, %v2298_v15  ;;  %v1064_v28 = vmul.f32 %v1033_v10, %v2319_v13  ;;  %v1065_v30 = vmul.f32 %v1033_v10, %v2812_v31 }
 0x373   : > { %v1070_v38 = vadd.f32 %v2592_v39, %v1034_v14  ;;  %v1071_v33 = vadd.f32 %v2592_v39, %v1035_v59  ;;  %v1072_v43 = vadd.f32 %v2592_v39, %v1036_v16  ;;  %v1073_v22 = vadd.f32 %v2592_v39, %v1037_v19 }
 0x374   : > { %v1074_v27 = vadd.f32 %v2592_v39, %v1038_v63  ;;  %v1075_v15 = vadd.f32 %v2592_v39, %v1039_v29  ;;  %v1076_v50 = vadd.f32 %v2592_v39, %v1040_v53  ;;  %v1077_v13 = vadd.f32 %v2592_v39, %v1041_v34  ;;  %s2679_s5 = scalar_lea.hbm %s2813_s7, %s1309_s26 }
 0x375   : > { %v1078_v52 = vadd.f32 %v2592_v39, %v1042_v40  ;;  %v1079_v10 = vadd.f32 %v2592_v39, %v1043_v11  ;;  %v1080_v0 = vadd.f32 %v2592_v39, %v1044_v12  ;;  %v1081_v14 = vadd.f32 %v2592_v39, %v1045_v44  ;;  %1102 = vst [vmem:[%s2644_s21] sm:$0xff] %v1070_v38 }
 0x376   : > { %1103 = vst [vmem:[%s2644_s21 + $0x8] sm:$0xff] %v1071_v33  ;;  %1104 = vst [vmem:[%s2644_s21 + $0x10] sm:$0xff] %v1072_v43  ;;  %v1082_v46 = vadd.f32 %v2592_v39, %v1046_v56  ;;  %v1083_v59 = vadd.f32 %v2592_v39, %v1047_v9  ;;  %v1084_v8 = vadd.f32 %v2592_v39, %v1048_v47 }
 0x377   : > { %1105 = vst [vmem:[%s2644_s21 + $0x18] sm:$0xff] %v1073_v22  ;;  %v1085_v16 = vadd.f32 %v2592_v39, %v1049_v37  ;;  %1106 = vst [vmem:[%s2644_s21 + $0x20] sm:$0xff] %v1074_v27  ;;  %v1086_v42 = vadd.f32 %v2592_v39, %v1050_v55  ;;  %v1087_v19 = vadd.f32 %v2592_v39, %v1051_v2 }
 0x378   : > { %1107 = vst [vmem:[%s2644_s21 + $0x28] sm:$0xff] %v1075_v15  ;;  %1108 = vst [vmem:[%s2644_s21 + $0x30] sm:$0xff] %v1076_v50  ;;  %v1088_v23 = vadd.f32 %v2592_v39, %v1052_v51  ;;  %v1089_v63 = vadd.f32 %v2592_v39, %v1053_v57  ;;  %v1090_v41 = vadd.f32 %v2592_v39, %v1054_v36 }
 0x379   : > { %1109 = vst [vmem:[%s2644_s21 + $0x38] sm:$0xff] %v1077_v13  ;;  %1110 = vst [vmem:[%s2644_s21 + $0x40] sm:$0xff] %v1078_v52  ;;  %v1091_v29 = vadd.f32 %v2592_v39, %v1055_v48  ;;  %v1092_v32 = vadd.f32 %v2592_v39, %v1056_v49  ;;  %v1093_v53 = vadd.f32 %v2592_v39, %v1057_v5 }
 0x37a   : > { %1111 = vst [vmem:[%s2644_s21 + $0x48] sm:$0xff] %v1079_v10  ;;  %1112 = vst [vmem:[%s2644_s21 + $0x50] sm:$0xff] %v1080_v0  ;;  %v1094_v7 = vadd.f32 %v2592_v39, %v1058_v18  ;;  %v1095_v34 = vadd.f32 %v2592_v39, %v1059_v58  ;;  %v1096_v40 = vadd.f32 %v2592_v39, %v1060_v60 }
 0x37b   : > { %1113 = vst [vmem:[%s2644_s21 + $0x58] sm:$0xff] %v1081_v14  ;;  %1114 = vst [vmem:[%s2644_s21 + $0x60] sm:$0xff] %v1082_v46  ;;  %v1097_v11 = vadd.f32 %v2592_v39, %v1061_v21  ;;  %v1098_v12 = vadd.f32 %v2592_v39, %v1062_v24  ;;  %v1099_v44 = vadd.f32 %v2592_v39, %v1063_v17 }
 0x37c   : > { %1115 = vst [vmem:[%s2644_s21 + $0x68] sm:$0xff] %v1083_v59  ;;  %1116 = vst [vmem:[%s2644_s21 + $0x70] sm:$0xff] %v1084_v8  ;;  %v1100_v56 = vadd.f32 %v2592_v39, %v1064_v28  ;;  %v1101_v9 = vadd.f32 %v2592_v39, %v1065_v30 }
 0x37d   : > { %1117 = vst [vmem:[%s2644_s21 + $0x78] sm:$0xff] %v1085_v16  ;;  %1118 = vst [vmem:[%s2644_s21 + $0x80] sm:$0xff] %v1086_v42 }
 0x37e   : > { %1119 = vst [vmem:[%s2644_s21 + $0x88] sm:$0xff] %v1087_v19  ;;  %1120 = vst [vmem:[%s2644_s21 + $0x90] sm:$0xff] %v1088_v23 }
 0x37f   : > { %1121 = vst [vmem:[%s2644_s21 + $0x98] sm:$0xff] %v1089_v63  ;;  %1122 = vst [vmem:[%s2644_s21 + $0xa0] sm:$0xff] %v1090_v41 }
 0x380   : > { %1123 = vst [vmem:[%s2644_s21 + $0xa8] sm:$0xff] %v1091_v29  ;;  %1124 = vst [vmem:[%s2644_s21 + $0xb0] sm:$0xff] %v1092_v32 }
 0x381   : > { %1125 = vst [vmem:[%s2644_s21 + $0xb8] sm:$0xff] %v1093_v53  ;;  %1126 = vst [vmem:[%s2644_s21 + $0xc0] sm:$0xff] %v1094_v7 }
 0x382   : > { %1127 = vst [vmem:[%s2644_s21 + $0xc8] sm:$0xff] %v1095_v34  ;;  %1128 = vst [vmem:[%s2644_s21 + $0xd0] sm:$0xff] %v1096_v40 }
 0x383   : > { %1129 = vst [vmem:[%s2644_s21 + $0xd8] sm:$0xff] %v1097_v11  ;;  %1130 = vst [vmem:[%s2644_s21 + $0xe0] sm:$0xff] %v1098_v12 }
 0x384   : > { %1131 = vst [vmem:[%s2644_s21 + $0xe8] sm:$0xff] %v1099_v44  ;;  %1132 = vst [vmem:[%s2644_s21 + $0xf0] sm:$0xff] %v1100_v56 }
 0x385   : > { %1133 = vst [vmem:[%s2644_s21 + $0xf8] sm:$0xff] %v1101_v9 }
 0x386   : > { %1769 = shalt.err (!%p1766_p9)
}
 0x387   : > { %s1770_s30 = scalar_lea.hbm %s2679_s5, 4096  ;;  %s1774_s21 = scalar_lea.hbm %s2813_s7, 16384 }
 0x388   : > { %p1771_p0 = scmp.ne.s32.totalorder %s2679_s5, %s1770_s30  ;;  %p1775_p6 = scmp.lt.u32.totalorder %s2679_s5, %s2813_s7 }
 0x389   : > { %p1776_p8 = scmp.lt.u32.totalorder %s1774_s21, %s1770_s30  ;;  %p1778_p7 = scmp.lt.u32.totalorder %s1770_s30, %s2679_s5 }
 0x38a   : > { %p1772_p1 = pnand %p1771_p0, %p2815_p11 }
 0x38b   : > { %p1777_p10 = por %p1776_p8, %p1775_p6 }
 0x38c   : > { %p1773_p13 = pneg %p1772_p1 }
 0x38d   : > { %p1779_p5 = por %p1778_p7, %p1777_p10 }
 0x38f   : > { %p1780_p12 = pnand %p1779_p5, %p1773_p13 }
 0x391   : > { %1783 = shalt.err (!%p1780_p12)
}
 0x392   : > { %s1891_s29 = smov 128   ;;  %s1892_s15 = smov 256  }
 0x393   : > { %s1893_s12 = smov 8  }
 0x394   : > { %1451 = dma.vmem_to_hbm [thread:$0]  (%p2815_p11), %s2689_s14, 4096, %s2679_s5, %s1135_s27, %s1891_s29, %s1892_s15, %s1893_s12  }
 0x395 PF: > { %s2816_s8 = sld [smem:[#allocation14_spill]]  ;;  %p1465_p4 = scmp.ge.s32.totalorder %s1882_s25, 2 }
 0x396   : > { %s1164_s10 = sand.u32 1, %s1854_s18  }
 0x397   : > { %s1165_s30 = scalar_lea.sflag [#allocation4], %s1164_s10 }
 0x39b   : > { %p2817_p3 = scmp.ne.s32.totalorder %s2816_s8, 0 }
 0x39d   : > { %p1461_p2 = pnand %p1465_p4, %p2817_p3 }
 0x39f   : > { %1837 = dma.done.wait (!%p1461_p2), %s1165_s30, 4096  }
 0x3a0   : > { %1839 = vsyncadd (!%p1461_p2), %s1165_s30, 4294963200  ;;  %s23_s25 = sadd.s32 1, %s1882_s25   ;;  %s2818_s9 = sld [smem:[#allocation11_spill]] }
 0x3a1   : > { %p20_p9 = scmp.ge.s32.totalorder %s23_s25, 6   ;;  %s2819_s14 = sld [smem:[#allocation12_spill]] }
 0x3a2   : > { %s2820_s15 = smov %s1846_s16  ;;  %s2821_s16 = smov %s1850_s17 }
 0x3a3   : > { %s2822_s17 = smov %s2082_s11  ;;  %s2823_s18 = smov %s1858_s19 }
 0x3a4   : > { %s2824_s19 = smov %s1862_s20  ;;  %s2825_s20 = smov %s2020_s13 }
 0x3a5   : > { %s2826_s21 = smov %s1874_s23  ;;  %s2827_s22 = smov %s1878_s24 }
 0x3a6   : > { %s2828_s23 = smov %s2818_s9  ;;  %22 = sbr.rel (!%p20_p9) target bundleno = 13 (0xd), region = 94 }
 0x3a7   : > { %s2829_s24 = smov %s2819_s14 }
 0x3ad   :  { %1170 = vsyncpa [#allocation3], 1 }
 0x3ae   :  { %1172 = vsyncpa [#allocation3 + $0x1], 1 }
 0x3af   :  { %1173 = vsyncpa [#allocation6], 1 }
 0x3b0   :  { %1175 = vsyncpa [#allocation6 + $0x1], 1 }
 0x3b1   :  { %1176 = vsyncpa [#allocation4], 1 }
 0x3b2   :  { %1178 = vsyncpa [#allocation4 + $0x1], 1 }

</bundles_post_ra>
